<compile_context>
chip_gen: v6e
topology: v6e:2x2x1
jax: 0.10.0
libtpu: 0.0.40
codegen_flags: <defaults>
</compile_context>

<pallas_src>
import numpy as np
import jax
import jax.numpy as jnp
from jax.experimental import pallas as pl
from jax.experimental.pallas import tpu as pltpu


# ----------------------------------------------------------------------------
# Kernel 1: one grid step per modality ("parallel"); each step computes the
# SA and OD branch of that modality with a single paired matmul.
#   x_r    : (3, B*T, N*F)
#   g_pair : (3, N*F, 2*N*H)   -- [SA | OD] folded (Wemb, Lk, Wgc)
#   b_pair : (3, 1,   2*N*H)
#   out    : (3, B,   2*N*H)   -- relu -> temporal mean
# ----------------------------------------------------------------------------
def branch_kernel(x_ref, g_ref, b_ref, o_ref):
    acc = jnp.dot(x_ref[0], g_ref[0],
                  preferred_element_type=jnp.float32) + b_ref[0]      # (BT, 2NH)
    h = jnp.maximum(acc, 0.0)                  # ReLU BEFORE the temporal mean
    B = o_ref.shape[1]
    BT, W = h.shape
    T = BT // B
    hm = jnp.mean(h.reshape(B, T, W), axis=1)                         # (B, 2NH)
    o_ref[0] = hm.astype(o_ref.dtype)


def run_branches(x_r, g_pair, b_pair, B):
    M, BT, NF = x_r.shape
    W = g_pair.shape[2]
    return pl.pallas_call(
        branch_kernel,
        out_shape=jax.ShapeDtypeStruct((M, B, W), jnp.float32),
        grid=(M,),
        in_specs=[
            pl.BlockSpec((1, BT, NF), lambda m: (m, 0, 0)),
            pl.BlockSpec((1, NF, W), lambda m: (m, 0, 0)),
            pl.BlockSpec((1, 1, W), lambda m: (m, 0, 0)),
        ],
        out_specs=pl.BlockSpec((1, B, W), lambda m: (m, 0, 0)),
        compiler_params=pltpu.CompilerParams(
            dimension_semantics=("parallel",)),
    )(x_r, g_pair, b_pair)


# ----------------------------------------------------------------------------
# Kernel 2: fused head.  ONE block-diagonal MLP matmul for all six branches,
# both 3-way dot attentions (VPU multiply + lane reduce + EUP reciprocal),
# the weight1/weight2 fusion and the AuxLoss.  Single grid step.
#   feats : (B*N, 6*H)   wo_bd : (6*H, 6*O)   bo_cat : (1, 6*O)
#   out   : (B, N, O) fused features (lane-dense 128) and (1,1) aux loss.
# ----------------------------------------------------------------------------
def head_kernel(f_ref, wbd_ref, bcat_ref, vloc_ref, vglob_ref,
                w1_ref, w2_ref, x_ref, aux_ref):
    B, N, O = x_ref.shape
    S = wbd_ref.shape[1] // O                                         # 6

    z = jnp.dot(f_ref[...], wbd_ref[...],
                preferred_element_type=jnp.float32) + bcat_ref[...]   # (B*N, 6O)
    z = jnp.maximum(z, 0.0)
    zs = [z[:, s * O:(s + 1) * O].reshape(B, N, O) for s in range(S)]
    bus_sa, metro_sa, taxi_sa, bus_od, metro_od, taxi_od = zs

    def attend(a, b, c, v_ref):
        v = v_ref[...].reshape(1, 1, O)                  # hoisted broadcast
        ea = jnp.sum(a * v, axis=-1, keepdims=True)      # (B, N, 1)
        eb = jnp.sum(b * v, axis=-1, keepdims=True)
        ec = jnp.sum(c * v, axis=-1, keepdims=True)
        m = jnp.maximum(jnp.maximum(ea, eb), ec)
        wa = jnp.exp(ea - m)
        wb = jnp.exp(eb - m)
        wc = jnp.exp(ec - m)
        inv = pl.reciprocal(wa + wb + wc, approx=True)   # EUP, not VPU divide
        return (wa * a + wb * b + wc * c) * inv

    local_att = attend(bus_sa, metro_sa, taxi_sa, vloc_ref)
    global_att = attend(bus_od, metro_od, taxi_od, vglob_ref)
    x_ref[...] = (local_att * w1_ref[...]
                  + global_att * w2_ref[...]).astype(x_ref.dtype)     # (B, N, O)

    # AuxLoss: mean over channels, cosine over nodes (per-norm eps=1e-6 clamp),
    # 1 - cos, batch mean, summed over the two modality triples.
    def aux_pair(a, b, c):
        sa = jnp.mean(a, axis=-1)                        # (B, N)
        sb = jnp.mean(b, axis=-1)
        sc = jnp.mean(c, axis=-1)

        def one_minus_cos(x, y):
            dot = jnp.sum(x * y, axis=-1, keepdims=True)              # (B, 1)
            nx = jnp.sqrt(jnp.sum(x * x, axis=-1, keepdims=True))
            ny = jnp.sqrt(jnp.sum(y * y, axis=-1, keepdims=True))
            return 1.0 - dot / (jnp.maximum(nx, 1e-6) * jnp.maximum(ny, 1e-6))

        s1 = one_minus_cos(sa, sb)
        s2 = one_minus_cos(sa, sc)
        return (jnp.sum(s1, axis=0, keepdims=True)
                + jnp.sum(s2, axis=0, keepdims=True)) / float(B)      # (1, 1)

    total = aux_pair(bus_sa, metro_sa, taxi_sa) + aux_pair(bus_od, metro_od, taxi_od)
    aux_ref[...] = total.astype(aux_ref.dtype)


def run_head(feats_cat, wo_bd, bo_cat, v_local, v_global, w1, w2):
    BN, SH = feats_cat.shape
    SO = wo_bd.shape[1]
    N = w1.shape[1]
    O = w1.shape[2]
    B = BN // N
    x_fused, aux = pl.pallas_call(
        head_kernel,
        out_shape=(jax.ShapeDtypeStruct((B, N, O), jnp.float32),
                   jax.ShapeDtypeStruct((1, 1), jnp.float32)),
        grid=(1,),
        in_specs=[
            pl.BlockSpec((BN, SH), lambda i: (0, 0)),
            pl.BlockSpec((SH, SO), lambda i: (0, 0)),
            pl.BlockSpec((1, SO), lambda i: (0, 0)),
            pl.BlockSpec((1, O), lambda i: (0, 0)),
            pl.BlockSpec((1, O), lambda i: (0, 0)),
            pl.BlockSpec((1, N, O), lambda i: (0, 0, 0)),
            pl.BlockSpec((1, N, O), lambda i: (0, 0, 0)),
        ],
        out_specs=(pl.BlockSpec((B, N, O), lambda i: (0, 0, 0)),
                   pl.BlockSpec((1, 1), lambda i: (0, 0))),
        compiler_params=pltpu.CompilerParams(
            dimension_semantics=("arbitrary",)),
    )(feats_cat, wo_bd, bo_cat, v_local, v_global, w1, w2)
    return x_fused, aux[0, 0]


# ----------------------------------------------------------------------------
# Graph preprocessing (host-side glue, mirrors Layer_GCN helpers).
# ----------------------------------------------------------------------------
def calculate_scaled_laplacian(adj):
    n = adj.shape[0]
    d = adj.sum(axis=1)
    lap = np.diag(d) - adj
    lam_max = float(np.linalg.eigvalsh(lap).max())
    if lam_max <= 0:
        lam_max = 2.0
    return (2.0 / lam_max) * lap - np.eye(n)


def calculate_cheb_poly(lap, ks):
    n = lap.shape[0]
    polys = [np.eye(n), lap.copy()]
    for _ in range(2, ks):
        polys.append(2.0 * lap @ polys[-1] - polys[-2])
    return np.stack(polys[:ks]).astype(np.float32)


def random_adj(rng, n):
    a = rng.uniform(0.0, 1.0, size=(n, n)).astype(np.float32)
    a = 0.5 * (a + a.T)
    np.fill_diagonal(a, 0.0)
    return a


# ----------------------------------------------------------------------------
# Full forward.
# ----------------------------------------------------------------------------
def mstgnn_forward(bus, metro, taxi, params):
    """Returns (out, loss_aux): out is (B, T_out, N, 1), loss_aux is scalar."""
    B, T, N, F = bus.shape
    lk_all = params["lk_all"]          # (6, Ks, N, N)
    wemb = params["wemb"]              # (6, F, E)
    bemb = params["bemb"]              # (6, E)
    wgc = params["wgc"]                # (6, Ks, E, H)
    bgc = params["bgc"]                # (6, H)
    wo = params["wo"]                  # (6, H, O)
    bo = params["bo"]                  # (6, 1, O)
    S = lk_all.shape[0]                # 6 branches: s = g*3 + m
    H = wgc.shape[3]
    O = wo.shape[2]

    # Exact weight folding (XLA-side, tiny):
    #   acc[b,t,n,h] = sum_{m,f} x[b,t,m,f] * G[(m,f),(n,h)] + bias[(n,h)]
    #   G[(m,f),(n,h)] = sum_{k,e} Lk[k,n,m] Wemb[f,e] Wgc[k,e,h]
    #   bias[(n,h)]    = sum_k rowsum(Lk[k])[n] * (bemb @ Wgc[k])[h] + bgc[h]
    g_all = jnp.einsum('sknm,sfe,skeh->smfnh', lk_all, wemb, wgc)
    g_all = g_all.reshape(S, N * F, N * H)
    row_sum = jnp.sum(lk_all, axis=-1)                        # (6, Ks, N)
    bW = jnp.einsum('se,skeh->skh', bemb, wgc)                # (6, Ks, H)
    bias_all = (jnp.einsum('skn,skh->snh', row_sum, bW)
                + bgc[:, None, :]).reshape(S, 1, N * H)

    # Pair the SA and OD branch of each modality along the output columns.
    g_pair = jnp.concatenate([g_all[:3], g_all[3:]], axis=-1)     # (3, NF, 2NH)
    b_pair = jnp.concatenate([bias_all[:3], bias_all[3:]], axis=-1)  # (3,1,2NH)

    x_r = jnp.stack([bus, metro, taxi], axis=0).reshape(3, B * T, N * F)

    hm_all = run_branches(x_r, g_pair, b_pair, B)             # (3, B, 2*N*H)

    # Tiny XLA relayout: bring the node axis into rows and order branches
    # as s = g*3 + m -> feats_cat (B*N, 6*H).
    hm5 = hm_all.reshape(3, B, 2, N, H)                       # (m, B, g, N, H)
    feats_cat = jnp.transpose(hm5, (1, 3, 2, 0, 4)).reshape(B * N, 2 * 3 * H)

    # Block-diagonal output-MLP weight: one (B*N, 6H) @ (6H, 6O) matmul.
    wo_bd = (wo[:, :, None, :]
             * jnp.eye(S, dtype=wo.dtype)[:, None, :, None]).reshape(S * H, S * O)
    bo_cat = bo.reshape(1, S * O)

    x_fused, loss_aux = run_head(feats_cat, wo_bd, bo_cat,
                                 params["v_local"], params["v_global"],
                                 params["weight1"], params["weight2"])

    # final out_fc projection + output permute as one lane-friendly XLA einsum
    w_out = params["w_out"]            # (O, T_out)
    b_out = params["b_out"]            # (1, T_out)
    T_out = w_out.shape[1]
    out = jnp.einsum('bnc,ct->btn', x_fused, w_out) + b_out.reshape(1, T_out, 1)
    out = out[..., None]               # (B, T_out, N, 1)
    return out, loss_aux


if __name__ == "__main__":
    # small shapes consistent with the module's forward
    B, T_in, N, F = 2, 8, 16, 4
    E, H, O = 16, 32, 128              # emd_dim, hide, out
    Ks = 3
    T_out = 4                          # output_window, out_dim = 1

    nprng = np.random.default_rng(0)

    def cheb(adj):
        return jnp.asarray(calculate_cheb_poly(calculate_scaled_laplacian(adj), Ks))

    sa_Lk = cheb(random_adj(nprng, N))
    od_bus_Lk = cheb(random_adj(nprng, N))
    od_metro_Lk = cheb(random_adj(nprng, N))
    od_taxi_Lk = cheb(random_adj(nprng, N))
    # branch order: bus_sa, metro_sa, taxi_sa, bus_od, metro_od, taxi_od
    lk_all = jnp.stack([sa_Lk, sa_Lk, sa_Lk, od_bus_Lk, od_metro_Lk, od_taxi_Lk])

    key = jax.random.PRNGKey(0)
    keys = jax.random.split(key, 12)
    xav = float(np.sqrt(6.0 / (N + O)))

    params = dict(
        lk_all=lk_all,
        wemb=0.1 * jax.random.normal(keys[0], (6, F, E), jnp.float32),
        bemb=jnp.zeros((6, E), jnp.float32),
        wgc=0.1 * jax.random.normal(keys[1], (6, Ks, E, H), jnp.float32),
        bgc=jnp.zeros((6, H), jnp.float32),
        wo=0.1 * jax.random.normal(keys[2], (6, H, O), jnp.float32),
        bo=jnp.zeros((6, 1, O), jnp.float32),
        v_local=0.1 * jax.random.normal(keys[3], (1, O), jnp.float32),
        v_global=0.1 * jax.random.normal(keys[4], (1, O), jnp.float32),
        weight1=jax.random.uniform(keys[5], (1, N, O), jnp.float32, -xav, xav),
        weight2=jax.random.uniform(keys[6], (1, N, O), jnp.float32, -xav, xav),
        w_out=0.1 * jax.random.normal(keys[7], (O, T_out), jnp.float32),
        b_out=jnp.zeros((1, T_out), jnp.float32),
    )

    bus = jax.random.normal(keys[8], (B, T_in, N, F), jnp.float32)
    metro = jax.random.normal(keys[9], (B, T_in, N, F), jnp.float32)
    taxi = jax.random.normal(keys[10], (B, T_in, N, F), jnp.float32)

    fwd = jax.jit(mstgnn_forward)
    out, loss_aux = fwd(bus, metro, taxi, params)
    jax.block_until_ready(out)
    jax.block_until_ready(loss_aux)

    assert out.shape == (B, T_out, N, 1), out.shape
    assert loss_aux.shape == (), loss_aux.shape
    assert bool(jnp.all(jnp.isfinite(out)))
    assert bool(jnp.isfinite(loss_aux))
    print("KERNEL_OK")
</pallas_src>

<mosaic_0001>
module attributes {stable_mosaic.version = 11 : i64} {
  func.func @branch_kernel(%arg0: i32, %arg1: memref<1x16x64xf32, #tpu.memory_space<vmem>>, %arg2: memref<1x64x1024xf32, #tpu.memory_space<vmem>>, %arg3: memref<1x1x1024xf32, #tpu.memory_space<vmem>>, %arg4: memref<1x2x1024xf32, #tpu.memory_space<vmem>>) attributes {dimension_semantics = [#tpu.dimension_semantics<parallel>], iteration_bounds = array<i64: 3>, scalar_prefetch = 0 : i64, scratch_operands = 0 : i64, tpu.core_type = #tpu.core_type<tc>, window_params = [{transform_indices = @transform_0, window_bounds = array<i64: 1, 16, 64>}, {transform_indices = @transform_1, window_bounds = array<i64: 1, 64, 1024>}, {transform_indices = @transform_2, window_bounds = array<i64: 1, 1, 1024>}, {transform_indices = @transform_3, window_bounds = array<i64: 1, 2, 1024>}]} {
    %c0 = arith.constant 0 : index
    %c0_0 = arith.constant 0 : index
    %c0_1 = arith.constant 0 : index
    %0 = vector.load %arg1[%c0, %c0_0, %c0_1] : memref<1x16x64xf32, #tpu.memory_space<vmem>>, vector<1x16x64xf32>
    %1 = vector.shape_cast %0 : vector<1x16x64xf32> to vector<16x64xf32>
    %c0_2 = arith.constant 0 : index
    %c0_3 = arith.constant 0 : index
    %c0_4 = arith.constant 0 : index
    %2 = vector.load %arg2[%c0_2, %c0_3, %c0_4] : memref<1x64x1024xf32, #tpu.memory_space<vmem>>, vector<1x64x1024xf32>
    %3 = vector.shape_cast %2 : vector<1x64x1024xf32> to vector<64x1024xf32>
    %cst = arith.constant dense<0.000000e+00> : vector<16x1024xf32>
    %4 = tpu.matmul %1, %3, %cst {dimension_numbers = #tpu.dot_dimension_numbers<[1], [0], [0], [1], [0, 0, 1, 1], [], []>} : vector<16x64xf32>, vector<64x1024xf32>, vector<16x1024xf32> -> vector<16x1024xf32>
    %c0_5 = arith.constant 0 : index
    %c0_6 = arith.constant 0 : index
    %c0_7 = arith.constant 0 : index
    %5 = vector.load %arg3[%c0_5, %c0_6, %c0_7] : memref<1x1x1024xf32, #tpu.memory_space<vmem>>, vector<1x1x1024xf32>
    %6 = vector.shape_cast %5 : vector<1x1x1024xf32> to vector<1x1024xf32>
    %7 = vector.broadcast %6 : vector<1x1024xf32> to vector<16x1024xf32>
    %8 = arith.addf %4, %7 : vector<16x1024xf32>
    %cst_8 = arith.constant 0.000000e+00 : f32
    %9 = vector.broadcast %cst_8 : f32 to vector<16x1024xf32>
    %10 = arith.maximumf %8, %9 : vector<16x1024xf32>
    %11 = vector.shape_cast %10 : vector<16x1024xf32> to vector<2x8x1024xf32>
    %cst_9 = arith.constant dense<0.000000e+00> : vector<2x1024xf32>
    %12 = vector.multi_reduction <add>, %11, %cst_9 [1] : vector<2x8x1024xf32> to vector<2x1024xf32>
    %cst_10 = arith.constant 8.000000e+00 : f32
    %13 = vector.broadcast %cst_10 : f32 to vector<2x1024xf32>
    %14 = arith.divf %12, %13 : vector<2x1024xf32>
    %c0_11 = arith.constant 0 : index
    %c0_12 = arith.constant 0 : index
    %c0_13 = arith.constant 0 : index
    %15 = vector.load %arg4[%c0_11, %c0_12, %c0_13] : memref<1x2x1024xf32, #tpu.memory_space<vmem>>, vector<1x2x1024xf32>
    %16 = vector.shape_cast %15 : vector<1x2x1024xf32> to vector<2x1024xf32>
    %17 = vector.shape_cast %14 : vector<2x1024xf32> to vector<1x2x1024xf32>
    tpu.vector_store %arg4[%c0_11, %c0_12, %c0_13], %17 {strides = array<i32>} : memref<1x2x1024xf32, #tpu.memory_space<vmem>>, vector<1x2x1024xf32>,
    return
  }
  func.func @transform_0(%arg0: i32) -> (i32, i32, i32) {
    %c0_i32 = arith.constant 0 : i32
    %c0_i32_0 = arith.constant 0 : i32
    %c0_i32_1 = arith.constant 0 : i32
    return %arg0, %c0_i32, %c0_i32_0 : i32, i32, i32
  }
  func.func @transform_1(%arg0: i32) -> (i32, i32, i32) {
    %c0_i32 = arith.constant 0 : i32
    %c0_i32_0 = arith.constant 0 : i32
    %c0_i32_1 = arith.constant 0 : i32
    return %arg0, %c0_i32, %c0_i32_0 : i32, i32, i32
  }
  func.func @transform_2(%arg0: i32) -> (i32, i32, i32) {
    %c0_i32 = arith.constant 0 : i32
    %c0_i32_0 = arith.constant 0 : i32
    %c0_i32_1 = arith.constant 0 : i32
    return %arg0, %c0_i32, %c0_i32_0 : i32, i32, i32
  }
  func.func @transform_3(%arg0: i32) -> (i32, i32, i32) {
    %c0_i32 = arith.constant 0 : i32
    %c0_i32_0 = arith.constant 0 : i32
    %c0_i32_1 = arith.constant 0 : i32
    return %arg0, %c0_i32, %c0_i32_0 : i32, i32, i32
  }
}

module attributes {stable_mosaic.version = 11 : i64} {
  func.func @head_kernel(%arg0: i32, %arg1: memref<32x192xf32, #tpu.memory_space<vmem>>, %arg2: memref<192x768xf32, #tpu.memory_space<vmem>>, %arg3: memref<1x768xf32, #tpu.memory_space<vmem>>, %arg4: memref<1x128xf32, #tpu.memory_space<vmem>>, %arg5: memref<1x128xf32, #tpu.memory_space<vmem>>, %arg6: memref<1x16x128xf32, #tpu.memory_space<vmem>>, %arg7: memref<1x16x128xf32, #tpu.memory_space<vmem>>, %arg8: memref<2x16x128xf32, #tpu.memory_space<vmem>>, %arg9: memref<1x1xf32, #tpu.memory_space<vmem>>) attributes {dimension_semantics = [#tpu.dimension_semantics<arbitrary>], iteration_bounds = array<i64: 1>, scalar_prefetch = 0 : i64, scratch_operands = 0 : i64, tpu.core_type = #tpu.core_type<tc>, window_params = [{pipeline_mode = #tpu.pipeline_mode<synchronous>, transform_indices = @transform_0, window_bounds = array<i64: 32, 192>}, {pipeline_mode = #tpu.pipeline_mode<synchronous>, transform_indices = @transform_1, window_bounds = array<i64: 192, 768>}, {pipeline_mode = #tpu.pipeline_mode<synchronous>, transform_indices = @transform_2, window_bounds = array<i64: 1, 768>}, {pipeline_mode = #tpu.pipeline_mode<synchronous>, transform_indices = @transform_3, window_bounds = array<i64: 1, 128>}, {pipeline_mode = #tpu.pipeline_mode<synchronous>, transform_indices = @transform_4, window_bounds = array<i64: 1, 128>}, {pipeline_mode = #tpu.pipeline_mode<synchronous>, transform_indices = @transform_5, window_bounds = array<i64: 1, 16, 128>}, {pipeline_mode = #tpu.pipeline_mode<synchronous>, transform_indices = @transform_6, window_bounds = array<i64: 1, 16, 128>}, {pipeline_mode = #tpu.pipeline_mode<synchronous>, transform_indices = @transform_7, window_bounds = array<i64: 2, 16, 128>}, {pipeline_mode = #tpu.pipeline_mode<synchronous>, transform_indices = @transform_8, window_bounds = array<i64: 1, 1>}]} {
    %c0 = arith.constant 0 : index
    %c0_0 = arith.constant 0 : index
    %0 = vector.load %arg1[%c0, %c0_0] : memref<32x192xf32, #tpu.memory_space<vmem>>, vector<32x192xf32>
    %c0_1 = arith.constant 0 : index
    %c0_2 = arith.constant 0 : index
    %1 = vector.load %arg2[%c0_1, %c0_2] : memref<192x768xf32, #tpu.memory_space<vmem>>, vector<192x768xf32>
    %cst = arith.constant dense<0.000000e+00> : vector<32x768xf32>
    %2 = tpu.matmul %0, %1, %cst {dimension_numbers = #tpu.dot_dimension_numbers<[1], [0], [0], [1], [0, 0, 1, 1], [], []>} : vector<32x192xf32>, vector<192x768xf32>, vector<32x768xf32> -> vector<32x768xf32>
    %c0_3 = arith.constant 0 : index
    %c0_4 = arith.constant 0 : index
    %3 = vector.load %arg3[%c0_3, %c0_4] : memref<1x768xf32, #tpu.memory_space<vmem>>, vector<1x768xf32>
    %4 = vector.broadcast %3 : vector<1x768xf32> to vector<32x768xf32>
    %5 = arith.addf %2, %4 : vector<32x768xf32>
    %cst_5 = arith.constant 0.000000e+00 : f32
    %6 = vector.broadcast %cst_5 : f32 to vector<32x768xf32>
    %7 = arith.maximumf %5, %6 : vector<32x768xf32>
    %8 = vector.extract_strided_slice %7 {offsets = [0, 0], sizes = [32, 128], strides = [1, 1]} : vector<32x768xf32> to vector<32x128xf32>
    %9 = vector.shape_cast %8 : vector<32x128xf32> to vector<2x16x128xf32>
    %10 = vector.extract_strided_slice %7 {offsets = [0, 128], sizes = [32, 128], strides = [1, 1]} : vector<32x768xf32> to vector<32x128xf32>
    %11 = vector.shape_cast %10 : vector<32x128xf32> to vector<2x16x128xf32>
    %12 = vector.extract_strided_slice %7 {offsets = [0, 256], sizes = [32, 128], strides = [1, 1]} : vector<32x768xf32> to vector<32x128xf32>
    %13 = vector.shape_cast %12 : vector<32x128xf32> to vector<2x16x128xf32>
    %14 = vector.extract_strided_slice %7 {offsets = [0, 384], sizes = [32, 128], strides = [1, 1]} : vector<32x768xf32> to vector<32x128xf32>
    %15 = vector.shape_cast %14 : vector<32x128xf32> to vector<2x16x128xf32>
    %16 = vector.extract_strided_slice %7 {offsets = [0, 512], sizes = [32, 128], strides = [1, 1]} : vector<32x768xf32> to vector<32x128xf32>
    %17 = vector.shape_cast %16 : vector<32x128xf32> to vector<2x16x128xf32>
    %18 = vector.extract_strided_slice %7 {offsets = [0, 640], sizes = [32, 128], strides = [1, 1]} : vector<32x768xf32> to vector<32x128xf32>
    %19 = vector.shape_cast %18 : vector<32x128xf32> to vector<2x16x128xf32>
    %c0_6 = arith.constant 0 : index
    %c0_7 = arith.constant 0 : index
    %20 = vector.load %arg4[%c0_6, %c0_7] : memref<1x128xf32, #tpu.memory_space<vmem>>, vector<1x128xf32>
    %21 = vector.shape_cast %20 : vector<1x128xf32> to vector<1x1x128xf32>
    %22 = vector.broadcast %21 : vector<1x1x128xf32> to vector<2x16x128xf32>
    %23 = arith.mulf %9, %22 : vector<2x16x128xf32>
    %cst_8 = arith.constant dense<0.000000e+00> : vector<2x16xf32>
    %24 = vector.multi_reduction <add>, %23, %cst_8 [2] : vector<2x16x128xf32> to vector<2x16xf32>
    %25 = vector.shape_cast %24 : vector<2x16xf32> to vector<2x16x1xf32>
    %26 = vector.broadcast %21 : vector<1x1x128xf32> to vector<2x16x128xf32>
    %27 = arith.mulf %11, %26 : vector<2x16x128xf32>
    %cst_9 = arith.constant dense<0.000000e+00> : vector<2x16xf32>
    %28 = vector.multi_reduction <add>, %27, %cst_9 [2] : vector<2x16x128xf32> to vector<2x16xf32>
    %29 = vector.shape_cast %28 : vector<2x16xf32> to vector<2x16x1xf32>
    %30 = vector.broadcast %21 : vector<1x1x128xf32> to vector<2x16x128xf32>
    %31 = arith.mulf %13, %30 : vector<2x16x128xf32>
    %cst_10 = arith.constant dense<0.000000e+00> : vector<2x16xf32>
    %32 = vector.multi_reduction <add>, %31, %cst_10 [2] : vector<2x16x128xf32> to vector<2x16xf32>
    %33 = vector.shape_cast %32 : vector<2x16xf32> to vector<2x16x1xf32>
    %34 = arith.maximumf %25, %29 : vector<2x16x1xf32>
    %35 = arith.maximumf %34, %33 : vector<2x16x1xf32>
    %36 = arith.subf %25, %35 : vector<2x16x1xf32>
    %37 = math.exp %36 : vector<2x16x1xf32>
    %38 = arith.subf %29, %35 : vector<2x16x1xf32>
    %39 = math.exp %38 : vector<2x16x1xf32>
    %40 = arith.subf %33, %35 : vector<2x16x1xf32>
    %41 = math.exp %40 : vector<2x16x1xf32>
    %42 = arith.addf %37, %39 : vector<2x16x1xf32>
    %43 = arith.addf %42, %41 : vector<2x16x1xf32>
    %44 = tpu.reciprocal %43 {approx = true} : vector<2x16x1xf32> -> vector<2x16x1xf32>
    %45 = vector.broadcast %37 : vector<2x16x1xf32> to vector<2x16x128xf32>
    %46 = arith.mulf %45, %9 : vector<2x16x128xf32>
    %47 = vector.broadcast %39 : vector<2x16x1xf32> to vector<2x16x128xf32>
    %48 = arith.mulf %47, %11 : vector<2x16x128xf32>
    %49 = arith.addf %46, %48 : vector<2x16x128xf32>
    %50 = vector.broadcast %41 : vector<2x16x1xf32> to vector<2x16x128xf32>
    %51 = arith.mulf %50, %13 : vector<2x16x128xf32>
    %52 = arith.addf %49, %51 : vector<2x16x128xf32>
    %53 = vector.broadcast %44 : vector<2x16x1xf32> to vector<2x16x128xf32>
    %54 = arith.mulf %52, %53 : vector<2x16x128xf32>
    %c0_11 = arith.constant 0 : index
    %c0_12 = arith.constant 0 : index
    %55 = vector.load %arg5[%c0_11, %c0_12] : memref<1x128xf32, #tpu.memory_space<vmem>>, vector<1x128xf32>
    %56 = vector.shape_cast %55 : vector<1x128xf32> to vector<1x1x128xf32>
    %57 = vector.broadcast %56 : vector<1x1x128xf32> to vector<2x16x128xf32>
    %58 = arith.mulf %15, %57 : vector<2x16x128xf32>
    %cst_13 = arith.constant dense<0.000000e+00> : vector<2x16xf32>
    %59 = vector.multi_reduction <add>, %58, %cst_13 [2] : vector<2x16x128xf32> to vector<2x16xf32>
    %60 = vector.shape_cast %59 : vector<2x16xf32> to vector<2x16x1xf32>
    %61 = vector.broadcast %56 : vector<1x1x128xf32> to vector<2x16x128xf32>
    %62 = arith.mulf %17, %61 : vector<2x16x128xf32>
    %cst_14 = arith.constant dense<0.000000e+00> : vector<2x16xf32>
    %63 = vector.multi_reduction <add>, %62, %cst_14 [2] : vector<2x16x128xf32> to vector<2x16xf32>
    %64 = vector.shape_cast %63 : vector<2x16xf32> to vector<2x16x1xf32>
    %65 = vector.broadcast %56 : vector<1x1x128xf32> to vector<2x16x128xf32>
    %66 = arith.mulf %19, %65 : vector<2x16x128xf32>
    %cst_15 = arith.constant dense<0.000000e+00> : vector<2x16xf32>
    %67 = vector.multi_reduction <add>, %66, %cst_15 [2] : vector<2x16x128xf32> to vector<2x16xf32>
    %68 = vector.shape_cast %67 : vector<2x16xf32> to vector<2x16x1xf32>
    %69 = arith.maximumf %60, %64 : vector<2x16x1xf32>
    %70 = arith.maximumf %69, %68 : vector<2x16x1xf32>
    %71 = arith.subf %60, %70 : vector<2x16x1xf32>
    %72 = math.exp %71 : vector<2x16x1xf32>
    %73 = arith.subf %64, %70 : vector<2x16x1xf32>
    %74 = math.exp %73 : vector<2x16x1xf32>
    %75 = arith.subf %68, %70 : vector<2x16x1xf32>
    %76 = math.exp %75 : vector<2x16x1xf32>
    %77 = arith.addf %72, %74 : vector<2x16x1xf32>
    %78 = arith.addf %77, %76 : vector<2x16x1xf32>
    %79 = tpu.reciprocal %78 {approx = true} : vector<2x16x1xf32> -> vector<2x16x1xf32>
    %80 = vector.broadcast %72 : vector<2x16x1xf32> to vector<2x16x128xf32>
    %81 = arith.mulf %80, %15 : vector<2x16x128xf32>
    %82 = vector.broadcast %74 : vector<2x16x1xf32> to vector<2x16x128xf32>
    %83 = arith.mulf %82, %17 : vector<2x16x128xf32>
    %84 = arith.addf %81, %83 : vector<2x16x128xf32>
    %85 = vector.broadcast %76 : vector<2x16x1xf32> to vector<2x16x128xf32>
    %86 = arith.mulf %85, %19 : vector<2x16x128xf32>
    %87 = arith.addf %84, %86 : vector<2x16x128xf32>
    %88 = vector.broadcast %79 : vector<2x16x1xf32> to vector<2x16x128xf32>
    %89 = arith.mulf %87, %88 : vector<2x16x128xf32>
    %c0_16 = arith.constant 0 : index
    %c0_17 = arith.constant 0 : index
    %c0_18 = arith.constant 0 : index
    %90 = vector.load %arg6[%c0_16, %c0_17, %c0_18] : memref<1x16x128xf32, #tpu.memory_space<vmem>>, vector<1x16x128xf32>
    %91 = vector.broadcast %90 : vector<1x16x128xf32> to vector<2x16x128xf32>
    %92 = arith.mulf %54, %91 : vector<2x16x128xf32>
    %c0_19 = arith.constant 0 : index
    %c0_20 = arith.constant 0 : index
    %c0_21 = arith.constant 0 : index
    %93 = vector.load %arg7[%c0_19, %c0_20, %c0_21] : memref<1x16x128xf32, #tpu.memory_space<vmem>>, vector<1x16x128xf32>
    %94 = vector.broadcast %93 : vector<1x16x128xf32> to vector<2x16x128xf32>
    %95 = arith.mulf %89, %94 : vector<2x16x128xf32>
    %96 = arith.addf %92, %95 : vector<2x16x128xf32>
    %c0_22 = arith.constant 0 : index
    %c0_23 = arith.constant 0 : index
    %c0_24 = arith.constant 0 : index
    %97 = vector.load %arg8[%c0_22, %c0_23, %c0_24] : memref<2x16x128xf32, #tpu.memory_space<vmem>>, vector<2x16x128xf32>
    tpu.vector_store %arg8[%c0_22, %c0_23, %c0_24], %96 {strides = array<i32>} : memref<2x16x128xf32, #tpu.memory_space<vmem>>, vector<2x16x128xf32>,
    %cst_25 = arith.constant dense<0.000000e+00> : vector<2x16xf32>
    %98 = vector.multi_reduction <add>, %9, %cst_25 [2] : vector<2x16x128xf32> to vector<2x16xf32>
    %cst_26 = arith.constant 1.280000e+02 : f32
    %99 = vector.broadcast %cst_26 : f32 to vector<2x16xf32>
    %100 = arith.divf %98, %99 : vector<2x16xf32>
    %cst_27 = arith.constant dense<0.000000e+00> : vector<2x16xf32>
    %101 = vector.multi_reduction <add>, %11, %cst_27 [2] : vector<2x16x128xf32> to vector<2x16xf32>
    %cst_28 = arith.constant 1.280000e+02 : f32
    %102 = vector.broadcast %cst_28 : f32 to vector<2x16xf32>
    %103 = arith.divf %101, %102 : vector<2x16xf32>
    %cst_29 = arith.constant dense<0.000000e+00> : vector<2x16xf32>
    %104 = vector.multi_reduction <add>, %13, %cst_29 [2] : vector<2x16x128xf32> to vector<2x16xf32>
    %cst_30 = arith.constant 1.280000e+02 : f32
    %105 = vector.broadcast %cst_30 : f32 to vector<2x16xf32>
    %106 = arith.divf %104, %105 : vector<2x16xf32>
    %107 = arith.mulf %100, %103 : vector<2x16xf32>
    %cst_31 = arith.constant dense<0.000000e+00> : vector<2xf32>
    %108 = vector.multi_reduction <add>, %107, %cst_31 [1] : vector<2x16xf32> to vector<2xf32>
    %109 = vector.shape_cast %108 : vector<2xf32> to vector<2x1xf32>
    %110 = arith.mulf %100, %100 : vector<2x16xf32>
    %cst_32 = arith.constant dense<0.000000e+00> : vector<2xf32>
    %111 = vector.multi_reduction <add>, %110, %cst_32 [1] : vector<2x16xf32> to vector<2xf32>
    %112 = vector.shape_cast %111 : vector<2xf32> to vector<2x1xf32>
    %113 = math.sqrt %112 : vector<2x1xf32>
    %114 = arith.mulf %103, %103 : vector<2x16xf32>
    %cst_33 = arith.constant dense<0.000000e+00> : vector<2xf32>
    %115 = vector.multi_reduction <add>, %114, %cst_33 [1] : vector<2x16xf32> to vector<2xf32>
    %116 = vector.shape_cast %115 : vector<2xf32> to vector<2x1xf32>
    %117 = math.sqrt %116 : vector<2x1xf32>
    %cst_34 = arith.constant 9.99999997E-7 : f32
    %118 = vector.broadcast %cst_34 : f32 to vector<2x1xf32>
    %119 = arith.maximumf %113, %118 : vector<2x1xf32>
    %cst_35 = arith.constant 9.99999997E-7 : f32
    %120 = vector.broadcast %cst_35 : f32 to vector<2x1xf32>
    %121 = arith.maximumf %117, %120 : vector<2x1xf32>
    %122 = arith.mulf %119, %121 : vector<2x1xf32>
    %123 = arith.divf %109, %122 : vector<2x1xf32>
    %cst_36 = arith.constant 1.000000e+00 : f32
    %124 = vector.broadcast %cst_36 : f32 to vector<2x1xf32>
    %125 = arith.subf %124, %123 : vector<2x1xf32>
    %126 = arith.mulf %100, %106 : vector<2x16xf32>
    %cst_37 = arith.constant dense<0.000000e+00> : vector<2xf32>
    %127 = vector.multi_reduction <add>, %126, %cst_37 [1] : vector<2x16xf32> to vector<2xf32>
    %128 = vector.shape_cast %127 : vector<2xf32> to vector<2x1xf32>
    %129 = arith.mulf %100, %100 : vector<2x16xf32>
    %cst_38 = arith.constant dense<0.000000e+00> : vector<2xf32>
    %130 = vector.multi_reduction <add>, %129, %cst_38 [1] : vector<2x16xf32> to vector<2xf32>
    %131 = vector.shape_cast %130 : vector<2xf32> to vector<2x1xf32>
    %132 = math.sqrt %131 : vector<2x1xf32>
    %133 = arith.mulf %106, %106 : vector<2x16xf32>
    %cst_39 = arith.constant dense<0.000000e+00> : vector<2xf32>
    %134 = vector.multi_reduction <add>, %133, %cst_39 [1] : vector<2x16xf32> to vector<2xf32>
    %135 = vector.shape_cast %134 : vector<2xf32> to vector<2x1xf32>
    %136 = math.sqrt %135 : vector<2x1xf32>
    %cst_40 = arith.constant 9.99999997E-7 : f32
    %137 = vector.broadcast %cst_40 : f32 to vector<2x1xf32>
    %138 = arith.maximumf %132, %137 : vector<2x1xf32>
    %cst_41 = arith.constant 9.99999997E-7 : f32
    %139 = vector.broadcast %cst_41 : f32 to vector<2x1xf32>
    %140 = arith.maximumf %136, %139 : vector<2x1xf32>
    %141 = arith.mulf %138, %140 : vector<2x1xf32>
    %142 = arith.divf %128, %141 : vector<2x1xf32>
    %cst_42 = arith.constant 1.000000e+00 : f32
    %143 = vector.broadcast %cst_42 : f32 to vector<2x1xf32>
    %144 = arith.subf %143, %142 : vector<2x1xf32>
    %cst_43 = arith.constant dense<0.000000e+00> : vector<1xf32>
    %145 = vector.multi_reduction <add>, %125, %cst_43 [0] : vector<2x1xf32> to vector<1xf32>
    %146 = vector.shape_cast %145 : vector<1xf32> to vector<1x1xf32>
    %cst_44 = arith.constant dense<0.000000e+00> : vector<1xf32>
    %147 = vector.multi_reduction <add>, %144, %cst_44 [0] : vector<2x1xf32> to vector<1xf32>
    %148 = vector.shape_cast %147 : vector<1xf32> to vector<1x1xf32>
    %149 = arith.addf %146, %148 : vector<1x1xf32>
    %cst_45 = arith.constant 2.000000e+00 : f32
    %150 = vector.broadcast %cst_45 : f32 to vector<1x1xf32>
    %151 = arith.divf %149, %150 : vector<1x1xf32>
    %cst_46 = arith.constant dense<0.000000e+00> : vector<2x16xf32>
    %152 = vector.multi_reduction <add>, %15, %cst_46 [2] : vector<2x16x128xf32> to vector<2x16xf32>
    %cst_47 = arith.constant 1.280000e+02 : f32
    %153 = vector.broadcast %cst_47 : f32 to vector<2x16xf32>
    %154 = arith.divf %152, %153 : vector<2x16xf32>
    %cst_48 = arith.constant dense<0.000000e+00> : vector<2x16xf32>
    %155 = vector.multi_reduction <add>, %17, %cst_48 [2] : vector<2x16x128xf32> to vector<2x16xf32>
    %cst_49 = arith.constant 1.280000e+02 : f32
    %156 = vector.broadcast %cst_49 : f32 to vector<2x16xf32>
    %157 = arith.divf %155, %156 : vector<2x16xf32>
    %cst_50 = arith.constant dense<0.000000e+00> : vector<2x16xf32>
    %158 = vector.multi_reduction <add>, %19, %cst_50 [2] : vector<2x16x128xf32> to vector<2x16xf32>
    %cst_51 = arith.constant 1.280000e+02 : f32
    %159 = vector.broadcast %cst_51 : f32 to vector<2x16xf32>
    %160 = arith.divf %158, %159 : vector<2x16xf32>
    %161 = arith.mulf %154, %157 : vector<2x16xf32>
    %cst_52 = arith.constant dense<0.000000e+00> : vector<2xf32>
    %162 = vector.multi_reduction <add>, %161, %cst_52 [1] : vector<2x16xf32> to vector<2xf32>
    %163 = vector.shape_cast %162 : vector<2xf32> to vector<2x1xf32>
    %164 = arith.mulf %154, %154 : vector<2x16xf32>
    %cst_53 = arith.constant dense<0.000000e+00> : vector<2xf32>
    %165 = vector.multi_reduction <add>, %164, %cst_53 [1] : vector<2x16xf32> to vector<2xf32>
    %166 = vector.shape_cast %165 : vector<2xf32> to vector<2x1xf32>
    %167 = math.sqrt %166 : vector<2x1xf32>
    %168 = arith.mulf %157, %157 : vector<2x16xf32>
    %cst_54 = arith.constant dense<0.000000e+00> : vector<2xf32>
    %169 = vector.multi_reduction <add>, %168, %cst_54 [1] : vector<2x16xf32> to vector<2xf32>
    %170 = vector.shape_cast %169 : vector<2xf32> to vector<2x1xf32>
    %171 = math.sqrt %170 : vector<2x1xf32>
    %cst_55 = arith.constant 9.99999997E-7 : f32
    %172 = vector.broadcast %cst_55 : f32 to vector<2x1xf32>
    %173 = arith.maximumf %167, %172 : vector<2x1xf32>
    %cst_56 = arith.constant 9.99999997E-7 : f32
    %174 = vector.broadcast %cst_56 : f32 to vector<2x1xf32>
    %175 = arith.maximumf %171, %174 : vector<2x1xf32>
    %176 = arith.mulf %173, %175 : vector<2x1xf32>
    %177 = arith.divf %163, %176 : vector<2x1xf32>
    %cst_57 = arith.constant 1.000000e+00 : f32
    %178 = vector.broadcast %cst_57 : f32 to vector<2x1xf32>
    %179 = arith.subf %178, %177 : vector<2x1xf32>
    %180 = arith.mulf %154, %160 : vector<2x16xf32>
    %cst_58 = arith.constant dense<0.000000e+00> : vector<2xf32>
    %181 = vector.multi_reduction <add>, %180, %cst_58 [1] : vector<2x16xf32> to vector<2xf32>
    %182 = vector.shape_cast %181 : vector<2xf32> to vector<2x1xf32>
    %183 = arith.mulf %154, %154 : vector<2x16xf32>
    %cst_59 = arith.constant dense<0.000000e+00> : vector<2xf32>
    %184 = vector.multi_reduction <add>, %183, %cst_59 [1] : vector<2x16xf32> to vector<2xf32>
    %185 = vector.shape_cast %184 : vector<2xf32> to vector<2x1xf32>
    %186 = math.sqrt %185 : vector<2x1xf32>
    %187 = arith.mulf %160, %160 : vector<2x16xf32>
    %cst_60 = arith.constant dense<0.000000e+00> : vector<2xf32>
    %188 = vector.multi_reduction <add>, %187, %cst_60 [1] : vector<2x16xf32> to vector<2xf32>
    %189 = vector.shape_cast %188 : vector<2xf32> to vector<2x1xf32>
    %190 = math.sqrt %189 : vector<2x1xf32>
    %cst_61 = arith.constant 9.99999997E-7 : f32
    %191 = vector.broadcast %cst_61 : f32 to vector<2x1xf32>
    %192 = arith.maximumf %186, %191 : vector<2x1xf32>
    %cst_62 = arith.constant 9.99999997E-7 : f32
    %193 = vector.broadcast %cst_62 : f32 to vector<2x1xf32>
    %194 = arith.maximumf %190, %193 : vector<2x1xf32>
    %195 = arith.mulf %192, %194 : vector<2x1xf32>
    %196 = arith.divf %182, %195 : vector<2x1xf32>
    %cst_63 = arith.constant 1.000000e+00 : f32
    %197 = vector.broadcast %cst_63 : f32 to vector<2x1xf32>
    %198 = arith.subf %197, %196 : vector<2x1xf32>
    %cst_64 = arith.constant dense<0.000000e+00> : vector<1xf32>
    %199 = vector.multi_reduction <add>, %179, %cst_64 [0] : vector<2x1xf32> to vector<1xf32>
    %200 = vector.shape_cast %199 : vector<1xf32> to vector<1x1xf32>
    %cst_65 = arith.constant dense<0.000000e+00> : vector<1xf32>
    %201 = vector.multi_reduction <add>, %198, %cst_65 [0] : vector<2x1xf32> to vector<1xf32>
    %202 = vector.shape_cast %201 : vector<1xf32> to vector<1x1xf32>
    %203 = arith.addf %200, %202 : vector<1x1xf32>
    %cst_66 = arith.constant 2.000000e+00 : f32
    %204 = vector.broadcast %cst_66 : f32 to vector<1x1xf32>
    %205 = arith.divf %203, %204 : vector<1x1xf32>
    %206 = arith.addf %151, %205 : vector<1x1xf32>
    %c0_67 = arith.constant 0 : index
    %c0_68 = arith.constant 0 : index
    %207 = vector.load %arg9[%c0_67, %c0_68] : memref<1x1xf32, #tpu.memory_space<vmem>>, vector<1x1xf32>
    tpu.vector_store %arg9[%c0_67, %c0_68], %206 {strides = array<i32>} : memref<1x1xf32, #tpu.memory_space<vmem>>, vector<1x1xf32>,
    return
  }
  func.func @transform_0(%arg0: i32) -> (i32, i32) {
    %c0_i32 = arith.constant 0 : i32
    %c0_i32_0 = arith.constant 0 : i32
    %c0_i32_1 = arith.constant 0 : i32
    return %c0_i32, %c0_i32_0 : i32, i32
  }
  func.func @transform_1(%arg0: i32) -> (i32, i32) {
    %c0_i32 = arith.constant 0 : i32
    %c0_i32_0 = arith.constant 0 : i32
    %c0_i32_1 = arith.constant 0 : i32
    return %c0_i32, %c0_i32_0 : i32, i32
  }
  func.func @transform_2(%arg0: i32) -> (i32, i32) {
    %c0_i32 = arith.constant 0 : i32
    %c0_i32_0 = arith.constant 0 : i32
    %c0_i32_1 = arith.constant 0 : i32
    return %c0_i32, %c0_i32_0 : i32, i32
  }
  func.func @transform_3(%arg0: i32) -> (i32, i32) {
    %c0_i32 = arith.constant 0 : i32
    %c0_i32_0 = arith.constant 0 : i32
    %c0_i32_1 = arith.constant 0 : i32
    return %c0_i32, %c0_i32_0 : i32, i32
  }
  func.func @transform_4(%arg0: i32) -> (i32, i32) {
    %c0_i32 = arith.constant 0 : i32
    %c0_i32_0 = arith.constant 0 : i32
    %c0_i32_1 = arith.constant 0 : i32
    return %c0_i32, %c0_i32_0 : i32, i32
  }
  func.func @transform_5(%arg0: i32) -> (i32, i32, i32) {
    %c0_i32 = arith.constant 0 : i32
    %c0_i32_0 = arith.constant 0 : i32
    %c0_i32_1 = arith.constant 0 : i32
    %c0_i32_2 = arith.constant 0 : i32
    return %c0_i32, %c0_i32_0, %c0_i32_1 : i32, i32, i32
  }
  func.func @transform_6(%arg0: i32) -> (i32, i32, i32) {
    %c0_i32 = arith.constant 0 : i32
    %c0_i32_0 = arith.constant 0 : i32
    %c0_i32_1 = arith.constant 0 : i32
    %c0_i32_2 = arith.constant 0 : i32
    return %c0_i32, %c0_i32_0, %c0_i32_1 : i32, i32, i32
  }
  func.func @transform_7(%arg0: i32) -> (i32, i32, i32) {
    %c0_i32 = arith.constant 0 : i32
    %c0_i32_0 = arith.constant 0 : i32
    %c0_i32_1 = arith.constant 0 : i32
    %c0_i32_2 = arith.constant 0 : i32
    return %c0_i32, %c0_i32_0, %c0_i32_1 : i32, i32, i32
  }
  func.func @transform_8(%arg0: i32) -> (i32, i32) {
    %c0_i32 = arith.constant 0 : i32
    %c0_i32_0 = arith.constant 0 : i32
    %c0_i32_1 = arith.constant 0 : i32
    return %c0_i32, %c0_i32_0 : i32, i32
  }
}

</mosaic_0001>

<bundles_post_ra>
// kernel: mstgnn_forward.2
= control target key start
LH: loop header
LB: loop body
LE: loop exit
PB: predicated region body
PF: predicated region fallthrough
CT: control target
= control target key end

     0   :  { %s1012_s12 = smov 0   ;;  %s1198_s0 = inlined_call_operand.vmem [shape: f32[3,16,64], index: 0, kind: input, shape index: {}]   ;;  %s1199_s1 = inlined_call_operand.vmem [shape: f32[3,64,1024], index: 1, kind: input, shape index: {}]   ;;  %s1200_s2 = inlined_call_operand.vmem [shape: f32[3,1,1024], index: 2, kind: input, shape index: {}]   ;;  %s1201_s3 = inlined_call_operand.vmem [shape: f32[3,2,1024], index: 3, kind: output, shape index: {}]  }
   0x1 LB: > { %s947_s13 = sadd.s32 4294967295, %s988_s12   ;;  %p951_p0 = scmp.ge.s32.totalorder %s988_s12, 1  ;;  %s988_s12 = sphi %s1012_s12, %s13_s12  }
   0x2   : > { %p156_p1 = scmp.lt.s32.totalorder %s988_s12, 4 }
   0x4   : > { %p157_p2 = pnand %p951_p0, %p156_p1 }
   0x5   : > { %p189_p3 = scmp.lt.s32.totalorder (!%p157_p2), %s947_s13, 2 }
   0x6   : > { %160 = sbr.rel (%p157_p2) target bundleno = 289 (0x121), region = 32 }
   0xb   : > { %v990_v0 = vmov 0.0   ;;  %s1203_s13 = smov (!%p189_p3, %s947_s13), 2  ;;  %vm316_vm0 = vcmask 523264   ;;  %vm849_vm1 = vcmask 1041409   ;;  %vm851_vm2 = vcmask 1043459  }
   0xc   : > { %387 = vmatprep.mubr.f32.mxu0 %v990_v0  ;;  %464 = vmatprep.mubr.f32.mxu1 %v990_v0  ;;  %s970_s14 = sshll.u32 %s1203_s13, 9  ;;  %s969_s18 = sshll.u32 %s1203_s13, 4  ;;  %vm853_vm3 = vcmask 1045509   ;;  %vm855_vm4 = vcmask 1047559  }
   0xd   : > { %s1028_s17 = scalar_lea.vmem %s1199_s1, %s970_s14  ;;  %s1064_s21 = scalar_lea.vmem %s1198_s0, %s969_s18 }
   0xe   : > { %v267_v1 = vld [vmem:[%s1028_s17 + $0x1c8] sm:$0xff]  ;;  %v269_v2 = vld [vmem:[%s1028_s17 + $0x1d8] sm:$0xff]  ;;  %v266_v3 = vld [vmem:[%s1028_s17 + $0x1c0] sm:$0xff]  ;;  %s956_s22 = sshll.u32 %s1203_s13, 3  ;;  %s1179_s28 = scalar_lea.vmem %s1201_s3, %s969_s18 }
   0xf   : > { %339 = vmatprep.subr.mxu0 %v267_v1  ;;  %416 = vmatprep.subr.mxu1 %v269_v2  ;;  %v268_v4 = vld [vmem:[%s1028_s17 + $0x1d0] sm:$0xff]  ;;  %v259_v5 = vld [vmem:[%s1028_s17 + $0x188] sm:$0xff]  ;;  %v261_v6 = vld [vmem:[%s1028_s17 + $0x198] sm:$0xff]  ;;  %s202_s25 = scalar_lea.vmem %s1200_s2, %s956_s22 }
  0x10   : > { %340 = vmatpush1.msra.mxu0 %v266_v3  ;;  %417 = vmatpush1.msra.mxu1 %v268_v4  ;;  %v258_v7 = vld [vmem:[%s1028_s17 + $0x180] sm:$0xff]  ;;  %v260_v8 = vld [vmem:[%s1028_s17 + $0x190] sm:$0xff]  ;;  %v251_v9 = vld [vmem:[%s1028_s17 + $0x148] sm:$0xff]  ;;  %v276_v4 = vlaneseq }
  0x11   : > { %341 = vmatprep.subr.mxu0 %v259_v5  ;;  %418 = vmatprep.subr.mxu1 %v261_v6  ;;  %v253_v10 = vld [vmem:[%s1028_s17 + $0x158] sm:$0xff]  ;;  %v250_v11 = vld [vmem:[%s1028_s17 + $0x140] sm:$0xff]  ;;  %v252_v12 = vld [vmem:[%s1028_s17 + $0x150] sm:$0xff] }
  0x12   : > { %342 = vmatpush1.msra.mxu0 %v258_v7  ;;  %419 = vmatpush1.msra.mxu1 %v260_v8  ;;  %v243_v13 = vld [vmem:[%s1028_s17 + $0x108] sm:$0xff]  ;;  %v245_v14 = vld [vmem:[%s1028_s17 + $0x118] sm:$0xff]  ;;  %v242_v15 = vld [vmem:[%s1028_s17 + $0x100] sm:$0xff]  ;;  %v1125_v5 = vshrl.u32 %v276_v4, 7 }
  0x13   : > { %343 = vmatprep.subr.mxu0 %v251_v9  ;;  %420 = vmatprep.subr.mxu1 %v253_v10  ;;  %v244_v16 = vld [vmem:[%s1028_s17 + $0x110] sm:$0xff]  ;;  %v235_v17 = vld [vmem:[%s1028_s17 + $0xc8] sm:$0xff]  ;;  %v237_v18 = vld [vmem:[%s1028_s17 + $0xd8] sm:$0xff] }
  0x14   : > { %344 = vmatpush1.msra.mxu0 %v250_v11  ;;  %421 = vmatpush1.msra.mxu1 %v252_v12  ;;  %v234_v19 = vld [vmem:[%s1028_s17 + $0xc0] sm:$0xff]  ;;  %v236_v20 = vld [vmem:[%s1028_s17 + $0xd0] sm:$0xff]  ;;  %v227_v21 = vld [vmem:[%s1028_s17 + $0x88] sm:$0xff]  ;;  %v278_v6 = vsub.s32 0, %v1125_v5  ;;  %v286_v7 = vsub.s32 2, %v1125_v5  ;;  %v290_v9 = vsub.s32 3, %v1125_v5 }
  0x15   : > { %345 = vmatprep.subr.mxu0 %v243_v13  ;;  %422 = vmatprep.subr.mxu1 %v245_v14  ;;  %v229_v22 = vld [vmem:[%s1028_s17 + $0x98] sm:$0xff]  ;;  %v226_v23 = vld [vmem:[%s1028_s17 + $0x80] sm:$0xff]  ;;  %v228_v24 = vld [vmem:[%s1028_s17 + $0x90] sm:$0xff] }
  0x16   : > { %346 = vmatpush1.msra.mxu0 %v242_v15  ;;  %423 = vmatpush1.msra.mxu1 %v244_v16  ;;  %v219_v25 = vld [vmem:[%s1028_s17 + $0x48] sm:$0xff]  ;;  %v221_v26 = vld [vmem:[%s1028_s17 + $0x58] sm:$0xff]  ;;  %v218_v27 = vld [vmem:[%s1028_s17 + $0x40] sm:$0xff] }
  0x17   : > { %347 = vmatprep.subr.mxu0 %v235_v17  ;;  %424 = vmatprep.subr.mxu1 %v237_v18  ;;  %v220_v28 = vld [vmem:[%s1028_s17 + $0x50] sm:$0xff]  ;;  %v211_v29 = vld [vmem:[%s1028_s17 + $0x8] sm:$0xff]  ;;  %v213_v30 = vld [vmem:[%s1028_s17 + $0x18] sm:$0xff] }
  0x18   : > { %348 = vmatpush1.msra.mxu0 %v234_v19  ;;  %425 = vmatpush1.msra.mxu1 %v236_v20  ;;  %v210_v31 = vld [vmem:[%s1028_s17] sm:$0xff]  ;;  %v212_v32 = vld [vmem:[%s1028_s17 + $0x10] sm:$0xff]  ;;  %v271_v34 = vld [vmem:[%s1028_s17 + $0x1e8] sm:$0xff]  ;;  %v294_v20 = vsub.s32 4, %v1125_v5 }
  0x19   : > { %349 = vmatprep.subr.mxu0 %v227_v21  ;;  %426 = vmatprep.subr.mxu1 %v229_v22  ;;  %v1071_v33 = vld [vmem:[%s1064_s21] sm:$0xff]  ;;  %v273_v35 = vld [vmem:[%s1028_s17 + $0x1f8] sm:$0xff]  ;;  %v272_v37 = vld [vmem:[%s1028_s17 + $0x1f0] sm:$0xff]  ;;  %v302_v21 = vsub.s32 6, %v1125_v5 }
  0x1a   : > { %350 = vmatpush1.msra.mxu0 %v226_v23  ;;  %427 = vmatpush1.msra.mxu1 %v228_v24  ;;  %v270_v36 = vld [vmem:[%s1028_s17 + $0x1e0] sm:$0xff]  ;;  %v263_v38 = vld [vmem:[%s1028_s17 + $0x1a8] sm:$0xff]  ;;  %v265_v39 = vld [vmem:[%s1028_s17 + $0x1b8] sm:$0xff] }
  0x1b   : > { %351 = vmatprep.subr.mxu0 %v219_v25  ;;  %428 = vmatprep.subr.mxu1 %v221_v26  ;;  %v262_v40 = vld [vmem:[%s1028_s17 + $0x1a0] sm:$0xff]  ;;  %v264_v41 = vld [vmem:[%s1028_s17 + $0x1b0] sm:$0xff]  ;;  %v209_v42 = vld [vmem:[%s1064_s21 + $0x8] sm:$0xff] }
  0x1c   : > { %352 = vmatpush1.msra.mxu0 %v218_v27  ;;  %429 = vmatpush1.msra.mxu1 %v220_v28  ;;  %v255_v43 = vld [vmem:[%s1028_s17 + $0x168] sm:$0xff]  ;;  %v257_v44 = vld [vmem:[%s1028_s17 + $0x178] sm:$0xff]  ;;  %v254_v45 = vld [vmem:[%s1028_s17 + $0x160] sm:$0xff] }
  0x1d   : > { %353 = vmatprep.subr.mxu0 %v211_v29  ;;  %430 = vmatprep.subr.mxu1 %v213_v30  ;;  %v256_v46 = vld [vmem:[%s1028_s17 + $0x170] sm:$0xff]  ;;  %v247_v47 = vld [vmem:[%s1028_s17 + $0x128] sm:$0xff]  ;;  %v249_v48 = vld [vmem:[%s1028_s17 + $0x138] sm:$0xff] }
  0x1e   : > { %354 = vmatpush1.msra.mxu0 %v210_v31  ;;  %431 = vmatpush1.msra.mxu1 %v212_v32  ;;  %v246_v49 = vld [vmem:[%s1028_s17 + $0x120] sm:$0xff]  ;;  %v248_v50 = vld [vmem:[%s1028_s17 + $0x130] sm:$0xff]  ;;  %v239_v51 = vld [vmem:[%s1028_s17 + $0xe8] sm:$0xff] }
  0x1f   : > { %959 = vmatmul.mubr.msk.f32.vlgmr.msra.gmra.mxu0 %vm316_vm0, %v1071_v33  ;;  %961 = vmatmul.mubr.msk.f32.vlgmr.msra.gmra.mxu1 %vm316_vm0, %v1071_v33  ;;  %v241_v52 = vld [vmem:[%s1028_s17 + $0xf8] sm:$0xff]  ;;  %v238_v53 = vld [vmem:[%s1028_s17 + $0xe0] sm:$0xff]  ;;  %v240_v54 = vld [vmem:[%s1028_s17 + $0xf0] sm:$0xff] }
  0x20   : > { %493 = vmatprep.subr.mxu0 %v271_v34  ;;  %570 = vmatprep.subr.mxu1 %v273_v35  ;;  %v231_v55 = vld [vmem:[%s1028_s17 + $0xa8] sm:$0xff]  ;;  %v233_v56 = vld [vmem:[%s1028_s17 + $0xb8] sm:$0xff]  ;;  %v230_v57 = vld [vmem:[%s1028_s17 + $0xa0] sm:$0xff] }
  0x21   : > { %494 = vmatpush1.msra.mxu0 %v270_v36  ;;  %571 = vmatpush1.msra.mxu1 %v272_v37  ;;  %v232_v58 = vld [vmem:[%s1028_s17 + $0xb0] sm:$0xff]  ;;  %v223_v59 = vld [vmem:[%s1028_s17 + $0x68] sm:$0xff]  ;;  %v225_v60 = vld [vmem:[%s1028_s17 + $0x78] sm:$0xff] }
  0x22   : > { %495 = vmatprep.subr.mxu0 %v263_v38  ;;  %572 = vmatprep.subr.mxu1 %v265_v39  ;;  %v222_v61 = vld [vmem:[%s1028_s17 + $0x60] sm:$0xff]  ;;  %v224_v62 = vld [vmem:[%s1028_s17 + $0x70] sm:$0xff]  ;;  %v215_v63 = vld [vmem:[%s1028_s17 + $0x28] sm:$0xff]  ;;  %v991_v38 = vmov 1983009808  }
  0x23   : > { %393 = vmatprep.mubr.f32.mxu0 %v990_v0  ;;  %470 = vmatprep.mubr.f32.mxu1 %v990_v0  ;;  %v217_v1 = vld [vmem:[%s1028_s17 + $0x38] sm:$0xff]  ;;  %v214_v2 = vld [vmem:[%s1028_s17 + $0x20] sm:$0xff]  ;;  %v216_v3 = vld [vmem:[%s1028_s17 + $0x30] sm:$0xff]  ;;  %v1148_v39 = vunpack.c.l.s4 %v991_v38 }
  0x24   : > { %496 = vmatpush1.msra.mxu0 %v262_v40  ;;  %573 = vmatpush1.msra.mxu1 %v264_v41  ;;  %v1132_v8 = vld [vmem:[%s202_s25] sm:$0xff] }
  0x25   : > { %960 = vmatmul.mubr.msk.f32.gmra.mxu0 %vm316_vm0, %v209_v42  ;;  %962 = vmatmul.mubr.msk.f32.gmra.mxu1 %vm316_vm0, %v209_v42  ;;  %v279_v10 = vrot.slane %v1132_v8, %v278_v6  ;;  %v287_v11 = vrot.slane %v1132_v8, %v286_v7  ;;  %v291_v13 = vrot.slane %v1132_v8, %v290_v9 }
  0x26   : > { %497 = vmatprep.subr.mxu0 %v255_v43  ;;  %574 = vmatprep.subr.mxu1 %v257_v44  ;;  %v1143_v32 = vrot.slane %v1132_v8, %v294_v20  ;;  %v298_v44 = vsub.s32 5, %v1125_v5 }
  0x27   : > { %498 = vmatpush1.msra.mxu0 %v254_v45  ;;  %575 = vmatpush1.msra.mxu1 %v256_v46 }
  0x28   : > { %499 = vmatprep.subr.mxu0 %v247_v47  ;;  %576 = vmatprep.subr.mxu1 %v249_v48  ;;  %v1152_v9 = vrot.slane %v1132_v8, %v298_v44 }
  0x29   : > { %500 = vmatpush1.msra.mxu0 %v246_v49  ;;  %577 = vmatpush1.msra.mxu1 %v248_v50 }
  0x2a   : > { %501 = vmatprep.subr.mxu0 %v239_v51  ;;  %578 = vmatprep.subr.mxu1 %v241_v52 }
  0x2b   : > { %502 = vmatpush1.msra.mxu0 %v238_v53  ;;  %579 = vmatpush1.msra.mxu1 %v240_v54 }
  0x2c   : > { %503 = vmatprep.subr.mxu0 %v231_v55  ;;  %580 = vmatprep.subr.mxu1 %v233_v56 }
  0x2d   : > { %504 = vmatpush1.msra.mxu0 %v230_v57  ;;  %581 = vmatpush1.msra.mxu1 %v232_v58 }
  0x2e   : > { %505 = vmatprep.subr.mxu0 %v223_v59  ;;  %582 = vmatprep.subr.mxu1 %v225_v60 }
  0x2f   : > { %506 = vmatpush1.msra.mxu0 %v222_v61  ;;  %583 = vmatpush1.msra.mxu1 %v224_v62 }
  0x30   : > { %507 = vmatprep.subr.mxu0 %v215_v63  ;;  %584 = vmatprep.subr.mxu1 %v217_v1 }
  0x31   : > { %508 = vmatpush1.msra.mxu0 %v214_v2  ;;  %541 = vmatprep.mubr.f32.mxu0 %v990_v0 }
  0x32   : > { %585 = vmatpush1.msra.mxu1 %v216_v3  ;;  %618 = vmatprep.mubr.f32.mxu1 %v990_v0 }
  0x33   : > { %963 = vmatmul.mubr.msk.f32.vlgmr.msra.gmra.mxu0 %vm316_vm0, %v1071_v33  ;;  %965 = vmatmul.mubr.msk.f32.vlgmr.msra.gmra.mxu1 %vm316_vm0, %v1071_v33  ;;  %v1146_v33 = vrot.slane %v1132_v8, %v302_v21 }
  0x34   : > { %547 = vmatprep.mubr.f32.mxu0 %v990_v0  ;;  %624 = vmatprep.mubr.f32.mxu1 %v990_v0  ;;  %v282_v0 = vsub.s32 1, %v1125_v5 }
  0x36   : > { %v283_v12 = vrot.slane %v1132_v8, %v282_v0 }
  0x37   : > { %964 = vmatmul.mubr.msk.f32.gmra.mxu0 %vm316_vm0, %v209_v42  ;;  %966 = vmatmul.mubr.msk.f32.gmra.mxu1 %vm316_vm0, %v209_v42 }
  0xdf   : > { %v389_v14 = vpop.f32.mrf.mxu0  ;;  %v466_v15 = vpop.f32.mrf.mxu1 }
  0xe0   : > { %v390_v16 = vadd.f32 %v389_v14, %v279_v10  ;;  %v467_v17 = vadd.f32 %v466_v15, %v287_v11 }
  0xe1   : > { %v391_v18 = vpop.f32.mrf.mxu0  ;;  %v468_v19 = vpop.f32.mrf.mxu1 }
  0xe2   : > { %v631_v22 = vmax.f32 %v390_v16, 0.0  ;;  %v633_v23 = vmax.f32 %v467_v17, 0.0  ;;  %v392_v24 = vadd.f32 %v391_v18, %v283_v12  ;;  %v469_v25 = vadd.f32 %v468_v19, %v291_v13 }
  0xe4   : > { %v647_v26 = vrot.slane %v631_v22, 4  ;;  %v659_v27 = vrot.slane %v633_v23, 4  ;;  %v632_v28 = vmax.f32 %v392_v24, 0.0  ;;  %v634_v29 = vmax.f32 %v469_v25, 0.0 }
  0xe5   : > { %v395_v30 = vpop.f32.mrf.mxu0  ;;  %v472_v31 = vpop.f32.mrf.mxu1  ;;  %v780_v24 = vunpack.c.0.s8 %v1148_v39 }
  0xe6   : > { %v648_v34 = vadd.f32 %v647_v26, %v631_v22  ;;  %v660_v35 = vadd.f32 %v659_v27, %v633_v23  ;;  %v653_v36 = vrot.slane %v632_v28, 4  ;;  %v665_v37 = vrot.slane %v634_v29, 4 }
  0xe7   : > { %v396_v40 = vadd.f32 %v395_v30, %v279_v10  ;;  %v473_v41 = vadd.f32 %v472_v31, %v287_v11  ;;  %v397_v42 = vpop.f32.mrf.mxu0  ;;  %v474_v43 = vpop.f32.mrf.mxu1  ;;  %v306_v10 = vsub.s32 7, %v1125_v5 }
  0xe8   : > { %v649_v45 = vrot.slane %v648_v34, 2  ;;  %v661_v46 = vrot.slane %v660_v35, 2  ;;  %v654_v47 = vadd.f32 %v653_v36, %v632_v28  ;;  %v666_v48 = vadd.f32 %v665_v37, %v634_v29 }
  0xe9   : > { %v639_v49 = vmax.f32 %v396_v40, 0.0  ;;  %v641_v50 = vmax.f32 %v473_v41, 0.0  ;;  %v398_v51 = vadd.f32 %v397_v42, %v283_v12  ;;  %v475_v52 = vadd.f32 %v474_v43, %v291_v13 }
  0xea   : > { %v650_v53 = vadd.f32 %v649_v45, %v648_v34  ;;  %v662_v54 = vadd.f32 %v661_v46, %v660_v35  ;;  %v655_v55 = vrot.slane %v654_v47, 2  ;;  %v667_v56 = vrot.slane %v666_v48, 2 }
  0xeb   : > { %v695_v57 = vrot.slane %v639_v49, 4  ;;  %v707_v58 = vrot.slane %v641_v50, 4  ;;  %v640_v59 = vmax.f32 %v398_v51, 0.0  ;;  %v642_v60 = vmax.f32 %v475_v52, 0.0 }
  0xec   : > { %v651_v61 = vrot.slane %v650_v53, 1  ;;  %v663_v62 = vrot.slane %v662_v54, 1  ;;  %v656_v63 = vadd.f32 %v655_v55, %v654_v47  ;;  %v668_v1 = vadd.f32 %v667_v56, %v666_v48 }
  0xed   : > { %v696_v2 = vadd.f32 %v695_v57, %v639_v49  ;;  %v708_v3 = vadd.f32 %v707_v58, %v641_v50  ;;  %v701_v4 = vrot.slane %v640_v59, 4  ;;  %v713_v6 = vrot.slane %v642_v60, 4 }
  0xee   : > { %v657_v7 = vrot.slane %v656_v63, 1  ;;  %v669_v0 = vrot.slane %v668_v1, 1  ;;  %v652_v15 = vadd.f32 %v651_v61, %v650_v53  ;;  %v664_v16 = vadd.f32 %v663_v62, %v662_v54 }
  0xef   : > { %v697_v11 = vrot.slane %v696_v2, 2  ;;  %v709_v12 = vrot.slane %v708_v3, 2  ;;  %v702_v13 = vadd.f32 %v701_v4, %v640_v59  ;;  %v714_v14 = vadd.f32 %v713_v6, %v642_v60 }
  0xf0   : > { %v658_v17 = vadd.f32 %v657_v7, %v656_v63  ;;  %v670_v18 = vadd.f32 %v669_v0, %v668_v1  ;;  %v1157_v26 = vrot.slane %v1132_v8, %v306_v10  ;;  %v744_v35 = vmul.f32 0.125, %v652_v15 }
  0xf1   : > { %v698_v19 = vadd.f32 %v697_v11, %v696_v2  ;;  %v710_v20 = vadd.f32 %v709_v12, %v708_v3  ;;  %v703_v21 = vrot.slane %v702_v13, 2  ;;  %v715_v22 = vrot.slane %v714_v14, 2 }
  0xf2   : > { %v745_v23 = vmul.f32 0.125, %v658_v17  ;;  %v747_v25 = vmul.f32 0.125, %v670_v18  ;;  %v746_v36 = vmul.f32 0.125, %v664_v16  ;;  %v1162_v45 = vsub.s32 %v780_v24, %v1125_v5 }
  0xf3   : > { %v699_v27 = vrot.slane %v698_v19, 1  ;;  %v711_v28 = vrot.slane %v710_v20, 1  ;;  %v704_v29 = vadd.f32 %v703_v21, %v702_v13  ;;  %v716_v30 = vadd.f32 %v715_v22, %v714_v14  ;;  %v543_v31 = vpop.f32.mrf.mxu0  ;;  %v620_v34 = vpop.f32.mrf.mxu1 }
  0xf4   : > { %v544_v37 = vadd.f32 %v543_v31, %v1143_v32  ;;  %v621_v38 = vadd.f32 %v620_v34, %v1146_v33  ;;  %v776_v8 = vcombine.low %v744_v35, %v745_v23  ;;  %v777_v46 = vcombine.low %v746_v36, %v747_v25 }
  0xf5   : > { %v700_v40 = vadd.f32 %v699_v27, %v698_v19  ;;  %v712_v41 = vadd.f32 %v711_v28, %v710_v20  ;;  %v705_v42 = vrot.slane %v704_v29, 1  ;;  %v717_v39 = vrot.slane %v716_v30, 1  ;;  %v545_v43 = vpop.f32.mrf.mxu0  ;;  %v622_v44 = vpop.f32.mrf.mxu1 }
  0xf6   : > { %v635_v53 = vmax.f32 %v544_v37, 0.0  ;;  %v637_v54 = vmax.f32 %v621_v38, 0.0  ;;  %v546_v55 = vadd.f32 %v545_v43, %v1152_v9  ;;  %v623_v58 = vadd.f32 %v622_v44, %v1157_v26 }
  0xf7   : > { %v752_v47 = vmul.f32 0.125, %v700_v40  ;;  %v754_v48 = vmul.f32 0.125, %v712_v41  ;;  %v706_v49 = vadd.f32 %v705_v42, %v704_v29  ;;  %v718_v50 = vadd.f32 %v717_v39, %v716_v30  ;;  %v549_v51 = vpop.f32.mrf.mxu0  ;;  %v626_v52 = vpop.f32.mrf.mxu1 }
  0xf8   : > { %v550_v59 = vadd.f32 %v549_v51, %v1143_v32  ;;  %v784_v5 = vrot.slane %v776_v8, %v1162_v45  ;;  %v791_v60 = vrot.slane %v777_v46, %v1162_v45  ;;  %v636_v61 = vmax.f32 %v546_v55, 0.0 }
  0xf9   : > { %v753_v56 = vmul.f32 0.125, %v706_v49  ;;  %v755_v57 = vmul.f32 0.125, %v718_v50  ;;  %v627_v62 = vadd.f32 %v626_v52, %v1146_v33  ;;  %v638_v2 = vmax.f32 %v623_v58, 0.0  ;;  %v551_v10 = vpop.f32.mrf.mxu0  ;;  %v628_v31 = vpop.f32.mrf.mxu1 }
  0xfa   : > { %v643_v3 = vmax.f32 %v550_v59, 0.0  ;;  %v671_v4 = vrot.slane %v635_v53, 4  ;;  %v683_v6 = vrot.slane %v637_v54, 4  ;;  %v677_v7 = vrot.slane %v636_v61, 4 }
  0xfb   : > { %v810_v63 = vcombine.low %v752_v47, %v753_v56  ;;  %v811_v1 = vcombine.low %v754_v48, %v755_v57  ;;  %v645_v0 = vmax.f32 %v627_v62, 0.0  ;;  %v689_v12 = vrot.slane %v638_v2, 4 }
  0xfc   : > { %v719_v13 = vrot.slane %v643_v3, 4  ;;  %v678_v14 = vadd.f32 %v677_v7, %v636_v61  ;;  %v552_v18 = vadd.f32 %v551_v10, %v1152_v9  ;;  %v792_v19 = vcombine.low %v784_v5, %v791_v60 }
  0xfd   : > { %v818_v11 = vrot.slane %v810_v63, %v1162_v45  ;;  %v825_v32 = vrot.slane %v811_v1, %v1162_v45  ;;  %v731_v15 = vrot.slane %v645_v0, 4  ;;  %v690_v16 = vadd.f32 %v689_v12, %v638_v2 }
  0xfe   : > { %v720_v17 = vadd.f32 %v719_v13, %v643_v3  ;;  %v672_v20 = vadd.f32 %v671_v4, %v635_v53  ;;  %v684_v21 = vadd.f32 %v683_v6, %v637_v54  ;;  %v679_v22 = vrot.slane %v678_v14, 2 }
  0xff   : > { %v826_v33 = vcombine.low %v818_v11, %v825_v32  ;;  %v691_v24 = vrot.slane %v690_v16, 2  ;;  %v732_v25 = vadd.f32 %v731_v15, %v645_v0  ;;  %v644_v27 = vmax.f32 %v552_v18, 0.0 }
 0x100   : > { %v721_v28 = vrot.slane %v720_v17, 2  ;;  %v673_v34 = vrot.slane %v672_v20, 2  ;;  %v685_v35 = vrot.slane %v684_v21, 2  ;;  %v680_v37 = vadd.f32 %v679_v22, %v678_v14 }
 0x101   : > { %v848_v23 = vrot.slane %v826_v33, 7  ;;  %v725_v30 = vrot.slane %v644_v27, 4  ;;  %v692_v38 = vadd.f32 %v691_v24, %v690_v16  ;;  %v733_v40 = vrot.slane %v732_v25, 2 }
 0x102   : > { %v722_v42 = vadd.f32 %v721_v28, %v720_v17  ;;  %v629_v43 = vadd.f32 %v628_v31, %v1157_v26  ;;  %v674_v44 = vadd.f32 %v673_v34, %v672_v20  ;;  %v686_v8 = vadd.f32 %v685_v35, %v684_v21 }
 0x103   : > { %v850_v29 = vsel %vm849_vm1, %v848_v23, %v792_v19  ;;  %v726_v39 = vadd.f32 %v725_v30, %v644_v27  ;;  %v681_v48 = vrot.slane %v680_v37, 1  ;;  %v693_v49 = vrot.slane %v692_v38, 1 }
 0x104   : > { %v852_v9 = vsel %vm851_vm2, %v848_v23, %v850_v29  ;;  %v646_v47 = vmax.f32 %v629_v43, 0.0  ;;  %v723_v50 = vrot.slane %v722_v42, 1  ;;  %v734_v51 = vadd.f32 %v733_v40, %v732_v25 }
 0x105   : > { %v854_v36 = vsel %vm853_vm3, %v848_v23, %v852_v9  ;;  %v727_v46 = vrot.slane %v726_v39, 2  ;;  %v675_v54 = vrot.slane %v674_v44, 1  ;;  %v687_v55 = vrot.slane %v686_v8, 1 }
 0x106   : > { %v856_v41 = vsel %vm855_vm4, %v848_v23, %v854_v36  ;;  %v737_v53 = vrot.slane %v646_v47, 4  ;;  %v682_v58 = vadd.f32 %v681_v48, %v680_v37  ;;  %v694_v59 = vadd.f32 %v693_v49, %v692_v38 }
 0x107   : > { %866 = vst [vmem:[%s1179_s28] sm:$0xff] %v856_v41  ;;  %v728_v52 = vadd.f32 %v727_v46, %v726_v39  ;;  %v724_v5 = vadd.f32 %v723_v50, %v722_v42  ;;  %v735_v60 = vrot.slane %v734_v51, 1  ;;  %v676_v62 = vadd.f32 %v675_v54, %v674_v44 }
 0x108   : > { %v738_v57 = vadd.f32 %v737_v53, %v646_v47  ;;  %v688_v63 = vadd.f32 %v687_v55, %v686_v8  ;;  %v749_v3 = vmul.f32 0.125, %v682_v58  ;;  %v751_v4 = vmul.f32 0.125, %v694_v59 }
 0x109   : > { %v729_v56 = vrot.slane %v728_v52, 1  ;;  %v756_v6 = vmul.f32 0.125, %v724_v5  ;;  %v736_v7 = vadd.f32 %v735_v60, %v734_v51  ;;  %v748_v10 = vmul.f32 0.125, %v676_v62 }
 0x10a   : > { %v739_v61 = vrot.slane %v738_v57, 2  ;;  %v750_v11 = vmul.f32 0.125, %v688_v63 }
 0x10b   : > { %v730_v26 = vadd.f32 %v729_v56, %v728_v52  ;;  %v793_v13 = vcombine.low %v748_v10, %v749_v3  ;;  %v758_v15 = vmul.f32 0.125, %v736_v7 }
 0x10c   : > { %v740_v2 = vadd.f32 %v739_v61, %v738_v57  ;;  %v794_v14 = vcombine.low %v750_v11, %v751_v4 }
 0x10d   : > { %v757_v1 = vmul.f32 0.125, %v730_v26  ;;  %v801_v18 = vrot.slane %v793_v13, %v1162_v45 }
 0x10e   : > { %v741_v0 = vrot.slane %v740_v2, 1  ;;  %v808_v19 = vrot.slane %v794_v14, %v1162_v45 }
 0x10f   : > { %v827_v32 = vcombine.low %v756_v6, %v757_v1 }
 0x110   : > { %v742_v12 = vadd.f32 %v741_v0, %v740_v2  ;;  %v809_v22 = vcombine.low %v801_v18, %v808_v19 }
 0x111   : > { %v835_v16 = vrot.slane %v827_v32, %v1162_v45 }
 0x112   : > { %v759_v33 = vmul.f32 0.125, %v742_v12 }
 0x114   : > { %v828_v17 = vcombine.low %v758_v15, %v759_v33 }
 0x116   : > { %v842_v20 = vrot.slane %v828_v17, %v1162_v45 }
 0x118   : > { %v843_v21 = vcombine.low %v835_v16, %v842_v20 }
 0x11a   : > { %v859_v23 = vrot.slane %v843_v21, 7 }
 0x11c   : > { %v860_v24 = vsel %vm849_vm1, %v859_v23, %v809_v22 }
 0x11d   : > { %v861_v25 = vsel %vm851_vm2, %v859_v23, %v860_v24 }
 0x11e   : > { %v862_v27 = vsel %vm853_vm3, %v859_v23, %v861_v25 }
 0x11f   : > { %v863_v28 = vsel %vm855_vm4, %v859_v23, %v862_v27 }
 0x120   : > { %867 = vst [vmem:[%s1179_s28 + $0x8] sm:$0xff] %v863_v28 }
 0x121 PF: > { %s13_s12 = sadd.s32 1, %s988_s12  }
 0x122   : > { %p10_p4 = scmp.ge.s32.totalorder %s13_s12, 5  }
 0x124   :  { %12 = sbr.rel (!%p10_p4) target bundleno = 1 (0x1), region = 68 }

// kernel: mstgnn_forward.3
= control target key start
LH: loop header
LB: loop body
LE: loop exit
PB: predicated region body
PF: predicated region fallthrough
CT: control target
= control target key end

     0   :  { %vm213_vm0 = vcmask 523264   ;;  %s2527_s0 = inlined_call_operand.vmem [shape: f32[32,192], index: 0, kind: input, shape index: {}]   ;;  %s2528_s1 = inlined_call_operand.vmem [shape: f32[192,768], index: 1, kind: input, shape index: {}]   ;;  %s2529_s2 = inlined_call_operand.vmem [shape: f32[1,768], index: 2, kind: input, shape index: {}]   ;;  %s2530_s3 = inlined_call_operand.vmem [shape: f32[1,128], index: 3, kind: input, shape index: {}]   ;;  %s2531_s4 = inlined_call_operand.vmem [shape: f32[1,128], index: 4, kind: input, shape index: {}]   ;;  %s2532_s5 = inlined_call_operand.vmem [shape: f32[1,16,128], index: 5, kind: input, shape index: {}]   ;;  %s2533_s6 = inlined_call_operand.vmem [shape: f32[1,16,128], index: 6, kind: input, shape index: {}]   ;;  %s2534_s7 = inlined_call_operand.vmem [shape: f32[2,16,128], index: 7, kind: output, shape index: {0}]   ;;  %s2535_s8 = inlined_call_operand.hbm [shape: f32[1,1], index: 8, kind: output, shape index: {1}]  }
   0x1   :  { %v128_v0 = vld [vmem:[%s2528_s1 + $0x2d8] sm:$0xff]  ;;  %v130_v1 = vld [vmem:[%s2528_s1 + $0x2e8] sm:$0xff]  ;;  %v127_v2 = vld [vmem:[%s2528_s1 + $0x2d0] sm:$0xff] }
   0x2   :  { %226 = vmatprep.subr.mxu0 %v128_v0  ;;  %315 = vmatprep.subr.mxu1 %v130_v1  ;;  %v129_v3 = vld [vmem:[%s2528_s1 + $0x2e0] sm:$0xff]  ;;  %v122_v4 = vld [vmem:[%s2528_s1 + $0x2a8] sm:$0xff]  ;;  %v124_v5 = vld [vmem:[%s2528_s1 + $0x2b8] sm:$0xff] }
   0x3   :  { %227 = vmatpush1.msra.mxu0 %v127_v2  ;;  %316 = vmatpush1.msra.mxu1 %v129_v3  ;;  %v121_v6 = vld [vmem:[%s2528_s1 + $0x2a0] sm:$0xff]  ;;  %v123_v7 = vld [vmem:[%s2528_s1 + $0x2b0] sm:$0xff]  ;;  %v116_v8 = vld [vmem:[%s2528_s1 + $0x278] sm:$0xff] }
   0x4   :  { %228 = vmatprep.subr.mxu0 %v122_v4  ;;  %317 = vmatprep.subr.mxu1 %v124_v5  ;;  %v118_v9 = vld [vmem:[%s2528_s1 + $0x288] sm:$0xff]  ;;  %v115_v10 = vld [vmem:[%s2528_s1 + $0x270] sm:$0xff]  ;;  %v117_v11 = vld [vmem:[%s2528_s1 + $0x280] sm:$0xff] }
   0x5   :  { %229 = vmatpush1.msra.mxu0 %v121_v6  ;;  %318 = vmatpush1.msra.mxu1 %v123_v7  ;;  %v110_v12 = vld [vmem:[%s2528_s1 + $0x248] sm:$0xff]  ;;  %v112_v13 = vld [vmem:[%s2528_s1 + $0x258] sm:$0xff]  ;;  %v109_v14 = vld [vmem:[%s2528_s1 + $0x240] sm:$0xff] }
   0x6   :  { %230 = vmatprep.subr.mxu0 %v116_v8  ;;  %319 = vmatprep.subr.mxu1 %v118_v9  ;;  %v111_v15 = vld [vmem:[%s2528_s1 + $0x250] sm:$0xff]  ;;  %v104_v16 = vld [vmem:[%s2528_s1 + $0x218] sm:$0xff]  ;;  %v106_v17 = vld [vmem:[%s2528_s1 + $0x228] sm:$0xff] }
   0x7   :  { %231 = vmatpush1.msra.mxu0 %v115_v10  ;;  %320 = vmatpush1.msra.mxu1 %v117_v11  ;;  %v103_v18 = vld [vmem:[%s2528_s1 + $0x210] sm:$0xff]  ;;  %v105_v19 = vld [vmem:[%s2528_s1 + $0x220] sm:$0xff]  ;;  %v98_v20 = vld [vmem:[%s2528_s1 + $0x1e8] sm:$0xff] }
   0x8   :  { %232 = vmatprep.subr.mxu0 %v110_v12  ;;  %321 = vmatprep.subr.mxu1 %v112_v13  ;;  %v100_v21 = vld [vmem:[%s2528_s1 + $0x1f8] sm:$0xff]  ;;  %v97_v22 = vld [vmem:[%s2528_s1 + $0x1e0] sm:$0xff]  ;;  %v99_v23 = vld [vmem:[%s2528_s1 + $0x1f0] sm:$0xff] }
   0x9   :  { %233 = vmatpush1.msra.mxu0 %v109_v14  ;;  %322 = vmatpush1.msra.mxu1 %v111_v15  ;;  %v92_v24 = vld [vmem:[%s2528_s1 + $0x1b8] sm:$0xff]  ;;  %v94_v25 = vld [vmem:[%s2528_s1 + $0x1c8] sm:$0xff]  ;;  %v91_v26 = vld [vmem:[%s2528_s1 + $0x1b0] sm:$0xff] }
   0xa   :  { %234 = vmatprep.subr.mxu0 %v104_v16  ;;  %323 = vmatprep.subr.mxu1 %v106_v17  ;;  %v93_v27 = vld [vmem:[%s2528_s1 + $0x1c0] sm:$0xff]  ;;  %v86_v28 = vld [vmem:[%s2528_s1 + $0x188] sm:$0xff]  ;;  %v88_v29 = vld [vmem:[%s2528_s1 + $0x198] sm:$0xff] }
   0xb   :  { %235 = vmatpush1.msra.mxu0 %v103_v18  ;;  %324 = vmatpush1.msra.mxu1 %v105_v19  ;;  %v85_v30 = vld [vmem:[%s2528_s1 + $0x180] sm:$0xff]  ;;  %v87_v31 = vld [vmem:[%s2528_s1 + $0x190] sm:$0xff]  ;;  %v80_v32 = vld [vmem:[%s2528_s1 + $0x158] sm:$0xff] }
   0xc   :  { %236 = vmatprep.subr.mxu0 %v98_v20  ;;  %325 = vmatprep.subr.mxu1 %v100_v21  ;;  %v82_v33 = vld [vmem:[%s2528_s1 + $0x168] sm:$0xff]  ;;  %v79_v34 = vld [vmem:[%s2528_s1 + $0x150] sm:$0xff]  ;;  %v81_v35 = vld [vmem:[%s2528_s1 + $0x160] sm:$0xff] }
   0xd   :  { %237 = vmatpush1.msra.mxu0 %v97_v22  ;;  %326 = vmatpush1.msra.mxu1 %v99_v23  ;;  %v74_v36 = vld [vmem:[%s2528_s1 + $0x128] sm:$0xff]  ;;  %v76_v37 = vld [vmem:[%s2528_s1 + $0x138] sm:$0xff]  ;;  %v73_v38 = vld [vmem:[%s2528_s1 + $0x120] sm:$0xff] }
   0xe   :  { %238 = vmatprep.subr.mxu0 %v92_v24  ;;  %327 = vmatprep.subr.mxu1 %v94_v25  ;;  %v75_v39 = vld [vmem:[%s2528_s1 + $0x130] sm:$0xff]  ;;  %v68_v40 = vld [vmem:[%s2528_s1 + $0xf8] sm:$0xff]  ;;  %v70_v41 = vld [vmem:[%s2528_s1 + $0x108] sm:$0xff] }
   0xf   :  { %239 = vmatpush1.msra.mxu0 %v91_v26  ;;  %328 = vmatpush1.msra.mxu1 %v93_v27  ;;  %v67_v42 = vld [vmem:[%s2528_s1 + $0xf0] sm:$0xff]  ;;  %v69_v43 = vld [vmem:[%s2528_s1 + $0x100] sm:$0xff]  ;;  %v62_v44 = vld [vmem:[%s2528_s1 + $0xc8] sm:$0xff] }
  0x10   :  { %240 = vmatprep.subr.mxu0 %v86_v28  ;;  %329 = vmatprep.subr.mxu1 %v88_v29  ;;  %v64_v45 = vld [vmem:[%s2528_s1 + $0xd8] sm:$0xff]  ;;  %v61_v46 = vld [vmem:[%s2528_s1 + $0xc0] sm:$0xff]  ;;  %v63_v47 = vld [vmem:[%s2528_s1 + $0xd0] sm:$0xff] }
  0x11   :  { %241 = vmatpush1.msra.mxu0 %v85_v30  ;;  %330 = vmatpush1.msra.mxu1 %v87_v31  ;;  %v56_v48 = vld [vmem:[%s2528_s1 + $0x98] sm:$0xff]  ;;  %v58_v49 = vld [vmem:[%s2528_s1 + $0xa8] sm:$0xff]  ;;  %v55_v50 = vld [vmem:[%s2528_s1 + $0x90] sm:$0xff] }
  0x12   :  { %242 = vmatprep.subr.mxu0 %v80_v32  ;;  %331 = vmatprep.subr.mxu1 %v82_v33  ;;  %v57_v51 = vld [vmem:[%s2528_s1 + $0xa0] sm:$0xff]  ;;  %v50_v52 = vld [vmem:[%s2528_s1 + $0x68] sm:$0xff]  ;;  %v52_v53 = vld [vmem:[%s2528_s1 + $0x78] sm:$0xff] }
  0x13   :  { %243 = vmatpush1.msra.mxu0 %v79_v34  ;;  %332 = vmatpush1.msra.mxu1 %v81_v35  ;;  %v49_v54 = vld [vmem:[%s2528_s1 + $0x60] sm:$0xff]  ;;  %v51_v55 = vld [vmem:[%s2528_s1 + $0x70] sm:$0xff]  ;;  %v44_v56 = vld [vmem:[%s2528_s1 + $0x38] sm:$0xff] }
  0x14   :  { %244 = vmatprep.subr.mxu0 %v74_v36  ;;  %333 = vmatprep.subr.mxu1 %v76_v37  ;;  %v46_v57 = vld [vmem:[%s2528_s1 + $0x48] sm:$0xff]  ;;  %v43_v58 = vld [vmem:[%s2528_s1 + $0x30] sm:$0xff]  ;;  %v45_v59 = vld [vmem:[%s2528_s1 + $0x40] sm:$0xff] }
  0x15   :  { %245 = vmatpush1.msra.mxu0 %v73_v38  ;;  %334 = vmatpush1.msra.mxu1 %v75_v39  ;;  %v38_v60 = vld [vmem:[%s2528_s1 + $0x8] sm:$0xff]  ;;  %v40_v61 = vld [vmem:[%s2528_s1 + $0x18] sm:$0xff]  ;;  %v37_v62 = vld [vmem:[%s2528_s1] sm:$0xff] }
  0x16   :  { %246 = vmatprep.subr.mxu0 %v68_v40  ;;  %335 = vmatprep.subr.mxu1 %v70_v41  ;;  %v39_v63 = vld [vmem:[%s2528_s1 + $0x10] sm:$0xff]  ;;  %v176_v0 = vld [vmem:[%s2528_s1 + $0x458] sm:$0xff]  ;;  %v178_v1 = vld [vmem:[%s2528_s1 + $0x468] sm:$0xff] }
  0x17   :  { %247 = vmatpush1.msra.mxu0 %v67_v42  ;;  %336 = vmatpush1.msra.mxu1 %v69_v43  ;;  %v175_v2 = vld [vmem:[%s2528_s1 + $0x450] sm:$0xff]  ;;  %v177_v3 = vld [vmem:[%s2528_s1 + $0x460] sm:$0xff]  ;;  %v170_v4 = vld [vmem:[%s2528_s1 + $0x428] sm:$0xff] }
  0x18   :  { %248 = vmatprep.subr.mxu0 %v62_v44  ;;  %337 = vmatprep.subr.mxu1 %v64_v45  ;;  %v172_v5 = vld [vmem:[%s2528_s1 + $0x438] sm:$0xff]  ;;  %v169_v6 = vld [vmem:[%s2528_s1 + $0x420] sm:$0xff]  ;;  %v171_v7 = vld [vmem:[%s2528_s1 + $0x430] sm:$0xff] }
  0x19   :  { %249 = vmatpush1.msra.mxu0 %v61_v46  ;;  %338 = vmatpush1.msra.mxu1 %v63_v47  ;;  %v164_v8 = vld [vmem:[%s2528_s1 + $0x3f8] sm:$0xff]  ;;  %v166_v9 = vld [vmem:[%s2528_s1 + $0x408] sm:$0xff]  ;;  %v163_v10 = vld [vmem:[%s2528_s1 + $0x3f0] sm:$0xff] }
  0x1a   :  { %250 = vmatprep.subr.mxu0 %v56_v48  ;;  %339 = vmatprep.subr.mxu1 %v58_v49  ;;  %v165_v11 = vld [vmem:[%s2528_s1 + $0x400] sm:$0xff]  ;;  %v158_v12 = vld [vmem:[%s2528_s1 + $0x3c8] sm:$0xff]  ;;  %v160_v13 = vld [vmem:[%s2528_s1 + $0x3d8] sm:$0xff] }
  0x1b   :  { %251 = vmatpush1.msra.mxu0 %v55_v50  ;;  %340 = vmatpush1.msra.mxu1 %v57_v51  ;;  %v157_v14 = vld [vmem:[%s2528_s1 + $0x3c0] sm:$0xff]  ;;  %v159_v15 = vld [vmem:[%s2528_s1 + $0x3d0] sm:$0xff]  ;;  %v152_v16 = vld [vmem:[%s2528_s1 + $0x398] sm:$0xff] }
  0x1c   :  { %252 = vmatprep.subr.mxu0 %v50_v52  ;;  %341 = vmatprep.subr.mxu1 %v52_v53  ;;  %v154_v17 = vld [vmem:[%s2528_s1 + $0x3a8] sm:$0xff]  ;;  %v151_v18 = vld [vmem:[%s2528_s1 + $0x390] sm:$0xff]  ;;  %v153_v19 = vld [vmem:[%s2528_s1 + $0x3a0] sm:$0xff] }
  0x1d   :  { %253 = vmatpush1.msra.mxu0 %v49_v54  ;;  %342 = vmatpush1.msra.mxu1 %v51_v55  ;;  %v146_v20 = vld [vmem:[%s2528_s1 + $0x368] sm:$0xff]  ;;  %v148_v21 = vld [vmem:[%s2528_s1 + $0x378] sm:$0xff]  ;;  %v145_v22 = vld [vmem:[%s2528_s1 + $0x360] sm:$0xff] }
  0x1e   :  { %254 = vmatprep.subr.mxu0 %v44_v56  ;;  %343 = vmatprep.subr.mxu1 %v46_v57  ;;  %v147_v23 = vld [vmem:[%s2528_s1 + $0x370] sm:$0xff]  ;;  %v140_v24 = vld [vmem:[%s2528_s1 + $0x338] sm:$0xff]  ;;  %v142_v25 = vld [vmem:[%s2528_s1 + $0x348] sm:$0xff] }
  0x1f   :  { %255 = vmatpush1.msra.mxu0 %v43_v58  ;;  %344 = vmatpush1.msra.mxu1 %v45_v59  ;;  %v139_v26 = vld [vmem:[%s2528_s1 + $0x330] sm:$0xff]  ;;  %v141_v27 = vld [vmem:[%s2528_s1 + $0x340] sm:$0xff]  ;;  %v134_v28 = vld [vmem:[%s2528_s1 + $0x308] sm:$0xff] }
  0x20   :  { %256 = vmatprep.subr.mxu0 %v38_v60  ;;  %345 = vmatprep.subr.mxu1 %v40_v61  ;;  %v136_v29 = vld [vmem:[%s2528_s1 + $0x318] sm:$0xff]  ;;  %v133_v30 = vld [vmem:[%s2528_s1 + $0x300] sm:$0xff]  ;;  %v1794_v31 = vld [vmem:[%s2527_s0 + $0x8] sm:$0xff] }
  0x21   :  { %257 = vmatpush1.msra.mxu0 %v37_v62  ;;  %346 = vmatpush1.msra.mxu1 %v39_v63  ;;  %v135_v32 = vld [vmem:[%s2528_s1 + $0x310] sm:$0xff]  ;;  %v1802_v33 = vld [vmem:[%s2527_s0] sm:$0xff]  ;;  %v132_v34 = vld [vmem:[%s2528_s1 + $0x2f8] sm:$0xff] }
  0x22   :  { %274 = vmatprep.subr.mxu0 %v176_v0  ;;  %363 = vmatprep.subr.mxu1 %v178_v1  ;;  %v131_v35 = vld [vmem:[%s2528_s1 + $0x2f0] sm:$0xff]  ;;  %v1817_v36 = vld [vmem:[%s2527_s0 + $0x18] sm:$0xff]  ;;  %v126_v37 = vld [vmem:[%s2528_s1 + $0x2c8] sm:$0xff] }
  0x23   :  { %275 = vmatpush2.msra.mxu0 %v175_v2  ;;  %364 = vmatpush2.msra.mxu1 %v177_v3  ;;  %v125_v38 = vld [vmem:[%s2528_s1 + $0x2c0] sm:$0xff]  ;;  %v1830_v39 = vld [vmem:[%s2527_s0 + $0x10] sm:$0xff] }
  0x24   :  { %276 = vmatprep.subr.mxu0 %v170_v4  ;;  %365 = vmatprep.subr.mxu1 %v172_v5 }
  0x25   :  { %277 = vmatpush2.msra.mxu0 %v169_v6  ;;  %366 = vmatpush2.msra.mxu1 %v171_v7 }
  0x26   :  { %278 = vmatprep.subr.mxu0 %v164_v8  ;;  %367 = vmatprep.subr.mxu1 %v166_v9 }
  0x27   :  { %279 = vmatpush2.msra.mxu0 %v163_v10  ;;  %368 = vmatpush2.msra.mxu1 %v165_v11 }
  0x28   :  { %280 = vmatprep.subr.mxu0 %v158_v12  ;;  %369 = vmatprep.subr.mxu1 %v160_v13 }
  0x29   :  { %281 = vmatpush2.msra.mxu0 %v157_v14  ;;  %370 = vmatpush2.msra.mxu1 %v159_v15 }
  0x2a   :  { %282 = vmatprep.subr.mxu0 %v152_v16  ;;  %371 = vmatprep.subr.mxu1 %v154_v17 }
  0x2b   :  { %283 = vmatpush2.msra.mxu0 %v151_v18  ;;  %372 = vmatpush2.msra.mxu1 %v153_v19 }
  0x2c   :  { %284 = vmatprep.subr.mxu0 %v146_v20  ;;  %373 = vmatprep.subr.mxu1 %v148_v21 }
  0x2d   :  { %285 = vmatpush2.msra.mxu0 %v145_v22  ;;  %374 = vmatpush2.msra.mxu1 %v147_v23 }
  0x2e   :  { %286 = vmatprep.subr.mxu0 %v140_v24  ;;  %375 = vmatprep.subr.mxu1 %v142_v25 }
  0x2f   :  { %287 = vmatpush2.msra.mxu0 %v139_v26  ;;  %376 = vmatpush2.msra.mxu1 %v141_v27 }
  0x30   :  { %288 = vmatprep.subr.mxu0 %v134_v28  ;;  %377 = vmatprep.subr.mxu1 %v136_v29 }
  0x31   :  { %289 = vmatpush2.msra.mxu0 %v133_v30  ;;  %1291 = vmatprep.mubr.msk.f32.mxu0 %vm213_vm0, %v1794_v31 }
  0x32   :  { %378 = vmatpush2.msra.mxu1 %v135_v32  ;;  %1295 = vmatprep.mubr.msk.f32.mxu1 %vm213_vm0, %v1794_v31 }
  0x33   :  { %291 = vmatmul.mubr.f32.vlgmr.msra.gmra.mxu0 %v1802_v33  ;;  %380 = vmatmul.mubr.f32.vlgmr.msra.gmra.mxu1 %v1802_v33 }
  0x34   :  { %404 = vmatprep.subr.mxu0 %v132_v34  ;;  %1305 = vmatprep.subr.mxu1 %v132_v34 }
  0x35   :  { %14 = vsyncpa [#allocation3], 0  ;;  %405 = vmatpush1.msra.mxu0 %v131_v35  ;;  %1296 = vmatprep.mubr.msk.f32.mxu1 %vm213_vm0, %v1817_v36  ;;  %v120_v40 = vld [vmem:[%s2528_s1 + $0x298] sm:$0xff]  ;;  %v119_v41 = vld [vmem:[%s2528_s1 + $0x290] sm:$0xff]  ;;  %v183_v24 = vlaneseq  ;;  %vm839_vm1 = vcmask 130112   ;;  %vm850_vm2 = vcmask 1041409  }
  0x36   :  { %406 = vmatprep.subr.mxu0 %v126_v37  ;;  %1329 = vmatpush1.msra.mxu1 %v131_v35  ;;  %v114_v42 = vld [vmem:[%s2528_s1 + $0x268] sm:$0xff]  ;;  %v113_v43 = vld [vmem:[%s2528_s1 + $0x260] sm:$0xff]  ;;  %v108_v44 = vld [vmem:[%s2528_s1 + $0x238] sm:$0xff]  ;;  %vm853_vm3 = vcmask 123904   ;;  %s1460_s14 = smov [#allocation2]  }
  0x37   :  { %407 = vmatpush1.msra.mxu0 %v125_v38  ;;  %386 = vmatmul.mubr.f32.gmra.mxu1 %v1830_v39  ;;  %v107_v45 = vld [vmem:[%s2528_s1 + $0x230] sm:$0xff]  ;;  %v102_v46 = vld [vmem:[%s2528_s1 + $0x208] sm:$0xff]  ;;  %v101_v47 = vld [vmem:[%s2528_s1 + $0x200] sm:$0xff]  ;;  %v2015_v25 = vshrl.u32 %v183_v24, 7 }
  0x38   :  { %1306 = vmatprep.subr.mxu1 %v126_v37  ;;  %408 = vmatprep.subr.mxu0 %v120_v40  ;;  %v96_v48 = vld [vmem:[%s2528_s1 + $0x1d8] sm:$0xff]  ;;  %v95_v49 = vld [vmem:[%s2528_s1 + $0x1d0] sm:$0xff]  ;;  %v90_v50 = vld [vmem:[%s2528_s1 + $0x1a8] sm:$0xff] }
  0x39   :  { %1292 = vmatprep.mubr.msk.f32.mxu0 %vm213_vm0, %v1817_v36  ;;  %1330 = vmatpush1.msra.mxu1 %v125_v38  ;;  %v1874_v51 = vld [vmem:[%s2527_s0 + $0x28] sm:$0xff]  ;;  %v89_v52 = vld [vmem:[%s2528_s1 + $0x1a0] sm:$0xff]  ;;  %v84_v54 = vld [vmem:[%s2528_s1 + $0x178] sm:$0xff]  ;;  %v185_v26 = vsub.s32 0, %v2015_v25  ;;  %v193_v27 = vsub.s32 2, %v2015_v25 }
  0x3a   :  { %409 = vmatpush1.msra.mxu0 %v119_v41  ;;  %1307 = vmatprep.subr.mxu1 %v120_v40  ;;  %v1882_v53 = vld [vmem:[%s2527_s0 + $0x20] sm:$0xff]  ;;  %v83_v55 = vld [vmem:[%s2528_s1 + $0x170] sm:$0xff]  ;;  %v78_v56 = vld [vmem:[%s2528_s1 + $0x148] sm:$0xff] }
  0x3b   :  { %297 = vmatmul.mubr.f32.gmra.mxu0 %v1830_v39  ;;  %410 = vmatprep.subr.mxu0 %v114_v42  ;;  %v1899_v57 = vld [vmem:[%s2527_s0 + $0x38] sm:$0xff]  ;;  %v77_v58 = vld [vmem:[%s2528_s1 + $0x140] sm:$0xff]  ;;  %v1907_v59 = vld [vmem:[%s2527_s0 + $0x30] sm:$0xff]  ;;  %s1281_s0 = sshll.u32 %s1460_s14, 4  ;;  %s1282_s0 = int_to_ptr.vmem [resolvable:$true] %s1281_s0 }
  0x3c   :  { %1331 = vmatpush1.msra.mxu1 %v119_v41  ;;  %411 = vmatpush1.msra.mxu0 %v113_v43  ;;  %v72_v60 = vld [vmem:[%s2528_s1 + $0x118] sm:$0xff]  ;;  %v71_v61 = vld [vmem:[%s2528_s1 + $0x110] sm:$0xff]  ;;  %v66_v62 = vld [vmem:[%s2528_s1 + $0xe8] sm:$0xff]  ;;  %s1438_s15 = scalar_lea.vmem %s1282_s0, 16  ;;  %s1442_s16 = scalar_lea.vmem %s1282_s0, 32 }
  0x3d   :  { %1308 = vmatprep.subr.mxu1 %v114_v42  ;;  %412 = vmatprep.subr.mxu0 %v108_v44  ;;  %v65_v63 = vld [vmem:[%s2528_s1 + $0xe0] sm:$0xff]  ;;  %v60_v0 = vld [vmem:[%s2528_s1 + $0xb8] sm:$0xff]  ;;  %v59_v1 = vld [vmem:[%s2528_s1 + $0xb0] sm:$0xff]  ;;  %p1439_p0 = scmp.ne.s32.totalorder %s1282_s0, %s1438_s15  ;;  %p1443_p1 = scmp.lt.s32.totalorder %s1282_s0, %s1282_s0 }
  0x3e   :  { %1332 = vmatpush1.msra.mxu1 %v113_v43  ;;  %413 = vmatpush1.msra.mxu0 %v107_v45  ;;  %v54_v2 = vld [vmem:[%s2528_s1 + $0x88] sm:$0xff]  ;;  %v53_v3 = vld [vmem:[%s2528_s1 + $0x80] sm:$0xff]  ;;  %v48_v4 = vld [vmem:[%s2528_s1 + $0x58] sm:$0xff]  ;;  %p1444_p2 = scmp.lt.s32.totalorder %s1442_s16, %s1438_s15 }
  0x3f   :  { %1309 = vmatprep.subr.mxu1 %v108_v44  ;;  %414 = vmatprep.subr.mxu0 %v102_v46  ;;  %v47_v5 = vld [vmem:[%s2528_s1 + $0x50] sm:$0xff]  ;;  %v42_v6 = vld [vmem:[%s2528_s1 + $0x28] sm:$0xff]  ;;  %v41_v7 = vld [vmem:[%s2528_s1 + $0x20] sm:$0xff] }
  0x40   :  { %1333 = vmatpush1.msra.mxu1 %v107_v45  ;;  %415 = vmatpush1.msra.mxu0 %v101_v47  ;;  %v180_v8 = vld [vmem:[%s2528_s1 + $0x478] sm:$0xff]  ;;  %v179_v9 = vld [vmem:[%s2528_s1 + $0x470] sm:$0xff]  ;;  %v174_v10 = vld [vmem:[%s2528_s1 + $0x448] sm:$0xff]  ;;  %p1445_p3 = por %p1444_p2, %p1443_p1 }
  0x41   :  { %1310 = vmatprep.subr.mxu1 %v102_v46  ;;  %416 = vmatprep.subr.mxu0 %v96_v48  ;;  %v173_v11 = vld [vmem:[%s2528_s1 + $0x440] sm:$0xff]  ;;  %v168_v12 = vld [vmem:[%s2528_s1 + $0x418] sm:$0xff]  ;;  %v167_v13 = vld [vmem:[%s2528_s1 + $0x410] sm:$0xff] }
  0x42   :  { %1334 = vmatpush1.msra.mxu1 %v101_v47  ;;  %417 = vmatpush1.msra.mxu0 %v95_v49  ;;  %v162_v14 = vld [vmem:[%s2528_s1 + $0x3e8] sm:$0xff]  ;;  %v161_v15 = vld [vmem:[%s2528_s1 + $0x3e0] sm:$0xff]  ;;  %v156_v16 = vld [vmem:[%s2528_s1 + $0x3b8] sm:$0xff]  ;;  %p1446_p4 = pnand %p1445_p3, %p1439_p0 }
  0x43   :  { %1311 = vmatprep.subr.mxu1 %v96_v48  ;;  %418 = vmatprep.subr.mxu0 %v90_v50  ;;  %v155_v17 = vld [vmem:[%s2528_s1 + $0x3b0] sm:$0xff]  ;;  %v150_v18 = vld [vmem:[%s2528_s1 + $0x388] sm:$0xff]  ;;  %v149_v19 = vld [vmem:[%s2528_s1 + $0x380] sm:$0xff] }
  0x44   :  { %1293 = vmatprep.mubr.msk.f32.mxu0 %vm213_vm0, %v1874_v51  ;;  %1335 = vmatpush1.msra.mxu1 %v95_v49  ;;  %v144_v20 = vld [vmem:[%s2528_s1 + $0x358] sm:$0xff]  ;;  %v143_v21 = vld [vmem:[%s2528_s1 + $0x350] sm:$0xff]  ;;  %v138_v22 = vld [vmem:[%s2528_s1 + $0x328] sm:$0xff] }
  0x45   :  { %419 = vmatpush1.msra.mxu0 %v89_v52  ;;  %1312 = vmatprep.subr.mxu1 %v90_v50  ;;  %v137_v23 = vld [vmem:[%s2528_s1 + $0x320] sm:$0xff] }
  0x46   :  { %303 = vmatmul.mubr.f32.gmra.mxu0 %v1882_v53  ;;  %420 = vmatprep.subr.mxu0 %v84_v54  ;;  %v2022_v28 = vld [vmem:[%s2529_s2] sm:$0x3f] }
  0x47   :  { %1336 = vmatpush1.msra.mxu1 %v89_v52  ;;  %421 = vmatpush1.msra.mxu0 %v83_v55  ;;  %v186_v29 = vrot.slane %v2022_v28, %v185_v26  ;;  %v194_v30 = vrot.slane %v2022_v28, %v193_v27 }
  0x48   :  { %1313 = vmatprep.subr.mxu1 %v84_v54  ;;  %422 = vmatprep.subr.mxu0 %v78_v56 }
  0x49   :  { %1294 = vmatprep.mubr.msk.f32.mxu0 %vm213_vm0, %v1899_v57  ;;  %1297 = vmatprep.mubr.msk.f32.mxu1 %vm213_vm0, %v1874_v51 }
  0x4a   :  { %1337 = vmatpush1.msra.mxu1 %v83_v55  ;;  %423 = vmatpush1.msra.mxu0 %v77_v58 }
  0x4b   :  { %309 = vmatmul.mubr.f32.gmra.mxu0 %v1907_v59  ;;  %392 = vmatmul.mubr.f32.gmra.mxu1 %v1882_v53 }
  0x4c   :  { %1314 = vmatprep.subr.mxu1 %v78_v56  ;;  %424 = vmatprep.subr.mxu0 %v72_v60 }
  0x4d   :  { %1338 = vmatpush1.msra.mxu1 %v77_v58  ;;  %425 = vmatpush1.msra.mxu0 %v71_v61 }
  0x4e   :  { %1315 = vmatprep.subr.mxu1 %v72_v60  ;;  %426 = vmatprep.subr.mxu0 %v66_v62 }
  0x4f   :  { %1298 = vmatprep.mubr.msk.f32.mxu1 %vm213_vm0, %v1899_v57  ;;  %1339 = vmatpush1.msra.mxu1 %v71_v61 }
  0x50   :  { %427 = vmatpush1.msra.mxu0 %v65_v63  ;;  %398 = vmatmul.mubr.f32.gmra.mxu1 %v1907_v59 }
  0x51   :  { %1316 = vmatprep.subr.mxu1 %v66_v62  ;;  %428 = vmatprep.subr.mxu0 %v60_v0 }
  0x52   :  { %1340 = vmatpush1.msra.mxu1 %v65_v63  ;;  %429 = vmatpush1.msra.mxu0 %v59_v1 }
  0x53   :  { %1317 = vmatprep.subr.mxu1 %v60_v0  ;;  %430 = vmatprep.subr.mxu0 %v54_v2 }
  0x54   :  { %1341 = vmatpush1.msra.mxu1 %v59_v1  ;;  %431 = vmatpush1.msra.mxu0 %v53_v3 }
  0x55   :  { %1318 = vmatprep.subr.mxu1 %v54_v2  ;;  %432 = vmatprep.subr.mxu0 %v48_v4 }
  0x56   :  { %1342 = vmatpush1.msra.mxu1 %v53_v3  ;;  %433 = vmatpush1.msra.mxu0 %v47_v5 }
  0x57   :  { %1319 = vmatprep.subr.mxu1 %v48_v4  ;;  %434 = vmatprep.subr.mxu0 %v42_v6 }
  0x58   :  { %1343 = vmatpush1.msra.mxu1 %v47_v5  ;;  %435 = vmatpush1.msra.mxu0 %v41_v7 }
  0x59   :  { %1320 = vmatprep.subr.mxu1 %v42_v6  ;;  %452 = vmatprep.subr.mxu0 %v180_v8 }
  0x5a   :  { %1344 = vmatpush1.msra.mxu1 %v41_v7  ;;  %453 = vmatpush2.msra.mxu0 %v179_v9 }
  0x5b   :  { %1321 = vmatprep.subr.mxu1 %v180_v8  ;;  %454 = vmatprep.subr.mxu0 %v174_v10 }
  0x5c   :  { %1345 = vmatpush2.msra.mxu1 %v179_v9  ;;  %455 = vmatpush2.msra.mxu0 %v173_v11 }
  0x5d   :  { %1322 = vmatprep.subr.mxu1 %v174_v10  ;;  %456 = vmatprep.subr.mxu0 %v168_v12 }
  0x5e   :  { %1346 = vmatpush2.msra.mxu1 %v173_v11  ;;  %457 = vmatpush2.msra.mxu0 %v167_v13 }
  0x5f   :  { %1323 = vmatprep.subr.mxu1 %v168_v12  ;;  %458 = vmatprep.subr.mxu0 %v162_v14 }
  0x60   :  { %1347 = vmatpush2.msra.mxu1 %v167_v13  ;;  %459 = vmatpush2.msra.mxu0 %v161_v15 }
  0x61   :  { %1324 = vmatprep.subr.mxu1 %v162_v14  ;;  %460 = vmatprep.subr.mxu0 %v156_v16 }
  0x62   :  { %1348 = vmatpush2.msra.mxu1 %v161_v15  ;;  %461 = vmatpush2.msra.mxu0 %v155_v17 }
  0x63   :  { %1325 = vmatprep.subr.mxu1 %v156_v16  ;;  %462 = vmatprep.subr.mxu0 %v150_v18 }
  0x64   :  { %1349 = vmatpush2.msra.mxu1 %v155_v17  ;;  %463 = vmatpush2.msra.mxu0 %v149_v19 }
  0x65   :  { %1326 = vmatprep.subr.mxu1 %v150_v18  ;;  %464 = vmatprep.subr.mxu0 %v144_v20 }
  0x66   :  { %1350 = vmatpush2.msra.mxu1 %v149_v19  ;;  %465 = vmatpush2.msra.mxu0 %v143_v21  ;;  %v201_v19 = vsub.s32 4, %v2015_v25 }
  0x67   :  { %1327 = vmatprep.subr.mxu1 %v144_v20  ;;  %466 = vmatprep.subr.mxu0 %v138_v22 }
  0x68   :  { %1351 = vmatpush2.msra.mxu1 %v143_v21  ;;  %467 = vmatpush2.msra.mxu0 %v137_v23  ;;  %v202_v20 = vrot.slane %v2022_v28, %v201_v19  ;;  %v205_v21 = vsub.s32 5, %v2015_v25 }
  0x69   :  { %1299 = vmatprep.mubr.msk.f32.mxu0 %vm213_vm0, %v1794_v31  ;;  %1328 = vmatprep.subr.mxu1 %v138_v22  ;;  %v189_v31 = vsub.s32 1, %v2015_v25 }
  0x6a   :  { %469 = vmatmul.mubr.f32.vlgmr.msra.gmra.mxu0 %v1802_v33  ;;  %1352 = vmatpush2.msra.mxu1 %v137_v23 }
  0x6b   :  { %1301 = vmatprep.mubr.msk.f32.mxu1 %vm213_vm0, %v1874_v51  ;;  %1300 = vmatprep.mubr.msk.f32.mxu0 %vm213_vm0, %v1817_v36  ;;  %v190_v38 = vrot.slane %v2022_v28, %v189_v31 }
  0x6c   :  { %481 = vmatmul.mubr.f32.vlgmr.msra.gmra.mxu1 %v1882_v53 }
  0x6d   :  { %1302 = vmatprep.mubr.msk.f32.mxu1 %vm213_vm0, %v1899_v57  ;;  %vm1013_vm0 = vcmask 1041408  }
  0x6e   :  { %475 = vmatmul.mubr.f32.gmra.mxu0 %v1830_v39  ;;  %v197_v39 = vsub.s32 3, %v2015_v25 }
  0x70   :  { %487 = vmatmul.mubr.f32.gmra.mxu1 %v1907_v59  ;;  %v198_v45 = vrot.slane %v2022_v28, %v197_v39 }
  0xf3   :  { %v292_v32 = vpop.f32.mrf.mxu0  ;;  %v381_v33 = vpop.f32.mrf.mxu1 }
  0xf4   :  { %v293_v34 = vadd.f32 %v292_v32, %v186_v29  ;;  %v382_v35 = vadd.f32 %v381_v33, %v194_v30 }
  0xf5   :  { %v383_v36 = vpop.f32.mrf.mxu1  ;;  %v294_v40 = vpop.f32.mrf.mxu0 }
  0xf6   :  { %v2027_v37 = vmax.f32 %v293_v34, 0.0  ;;  %v2031_v42 = vmax.f32 %v382_v35, 0.0  ;;  %v295_v44 = vadd.f32 %v294_v40, %v190_v38  ;;  %v384_v51 = vadd.f32 %v383_v36, %v198_v45 }
  0xf7   :  { %v387_v41 = vpop.f32.mrf.mxu1 }
  0xf8   :  { %v388_v43 = vadd.f32 %v387_v41, %v194_v30  ;;  %783 = vadd.xlane.f32.xlu0 %v2027_v37  ;;  %v2039_v50 = vmax.f32 %v295_v44, 0.0  ;;  %v2044_v56 = vmax.f32 %v384_v51, 0.0 }
  0xf9   :  { %v389_v48 = vpop.f32.mrf.mxu1 }
  0xfa   :  { %v2035_v46 = vmax.f32 %v388_v43, 0.0  ;;  %v390_v53 = vadd.f32 %v389_v48, %v198_v45 }
  0xfb   :  { %v298_v47 = vpop.f32.mrf.mxu0 }
  0xfc   :  { %810 = vadd.xlane.f32.xlu1 %v2035_v46  ;;  %808 = vadd.xlane.f32.xlu0 %v2031_v42  ;;  %v299_v54 = vadd.f32 %v298_v47, %v186_v29  ;;  %v2046_v57 = vmax.f32 %v390_v53, 0.0 }
  0xfd   :  { %v300_v49 = vpop.f32.mrf.mxu0 }
  0xfe   :  { %v301_v52 = vadd.f32 %v300_v49, %v190_v38  ;;  %v2049_v58 = vmax.f32 %v299_v54, 0.0 }
 0x100   :  { %v2041_v55 = vmax.f32 %v301_v52, 0.0  ;;  %796 = vadd.xlane.f32.xlu0 %v2039_v50  ;;  %v2104_v52 = vld [vmem:[%s2530_s3] ss:$0 sm:$0xff] }
 0x101   :  { %v524_v54 = vmul.f32 %v2104_v52, %v2027_v37 }
 0x102   :  { %798 = vadd.xlane.f32.xlu1 %v2041_v55 }
 0x104   :  { %1031 = vadd.xlane.f32.xlu0 %v2044_v56 }
 0x106   :  { %v304_v59 = vpop.f32.mrf.mxu0  ;;  %1033 = vadd.xlane.f32.xlu1 %v2046_v57 }
 0x107   :  { %v305_v60 = vadd.f32 %v304_v59, %v186_v29  ;;  %v525_v59 = vmul.f32 %v2104_v52, %v2049_v58 }
 0x108   :  { %v306_v61 = vpop.f32.mrf.mxu0  ;;  %785 = vadd.xlane.f32.xlu0 %v2049_v58 }
 0x109   :  { %v2054_v62 = vmax.f32 %v305_v60, 0.0  ;;  %v307_v1 = vadd.f32 %v306_v61, %v190_v38 }
 0x10b   :  { %v310_v63 = vpop.f32.mrf.mxu0  ;;  %v393_v0 = vpop.f32.mrf.mxu1  ;;  %787 = vadd.xlane.f32.xlu1 %v2054_v62  ;;  %v2061_v8 = vmax.f32 %v307_v1, 0.0  ;;  %v526_v60 = vmul.f32 %v2104_v52, %v2054_v62 }
 0x10c   :  { %v311_v2 = vadd.f32 %v310_v63, %v186_v29  ;;  %v394_v3 = vadd.f32 %v393_v0, %v194_v30  ;;  %v536_v63 = vmul.f32 %v2104_v52, %v2039_v50  ;;  %v537_v0 = vmul.f32 %v2104_v52, %v2041_v55 }
 0x10d   :  { %v395_v4 = vpop.f32.mrf.mxu1  ;;  %v312_v7 = vpop.f32.mrf.mxu0  ;;  %v538_v1 = vmul.f32 %v2104_v52, %v2061_v8 }
 0x10e   :  { %v2057_v5 = vmax.f32 %v311_v2, 0.0  ;;  %v2059_v6 = vmax.f32 %v394_v3, 0.0  ;;  %v396_v9 = vadd.f32 %v395_v4, %v198_v45  ;;  %v313_v12 = vadd.f32 %v312_v7, %v190_v38  ;;  %v2128_v2 = vld [vmem:[%s2531_s4] ss:$0 sm:$0xff] }
 0x10f   :  { %v647_v4 = vmul.f32 %v2128_v2, %v2044_v56  ;;  %v648_v7 = vmul.f32 %v2128_v2, %v2046_v57 }
 0x110   :  { %v399_v10 = vpop.f32.mrf.mxu1  ;;  %789 = vadd.xlane.f32.xlu1 %v2057_v5  ;;  %812 = vadd.xlane.f32.xlu0 %v2059_v6  ;;  %v2067_v15 = vmax.f32 %v396_v9, 0.0  ;;  %v2070_v16 = vmax.f32 %v313_v12, 0.0  ;;  %v527_v61 = vmul.f32 %v2104_v52, %v2057_v5 }
 0x111   :  { %v400_v11 = vadd.f32 %v399_v10, %v194_v30  ;;  %v206_v30 = vrot.slane %v2022_v28, %v205_v21 }
 0x112   :  { %v401_v13 = vpop.f32.mrf.mxu1  ;;  %v539_v3 = vmul.f32 %v2104_v52, %v2070_v16  ;;  %v649_v9 = vmul.f32 %v2128_v2, %v2067_v15 }
 0x113   :  { %v2065_v14 = vmax.f32 %v400_v11, 0.0  ;;  %v402_v17 = vadd.f32 %v401_v13, %v198_v45 }
 0x114   :  { %800 = vadd.xlane.f32.xlu0 %v2061_v8 }
 0x115   :  { %2540 = vst [vmem:[#allocation5_spill] sm:$0xff] %v2065_v14  ;;  %814 = vadd.xlane.f32.xlu1 %v2065_v14  ;;  %v2074_v18 = vmax.f32 %v402_v17, 0.0 }
 0x117   :  { %2541 = vst [vmem:[#allocation6_spill] sm:$0xff] %v2074_v18  ;;  %v650_v10 = vmul.f32 %v2128_v2, %v2074_v18 }
 0x118   :  { %1035 = vadd.xlane.f32.xlu0 %v2067_v15 }
 0x119   :  { %802 = vadd.xlane.f32.xlu1 %v2070_v16 }
 0x11d   :  { %1037 = vadd.xlane.f32.xlu1 %v2074_v18 }
 0x12a   :  { %v470_v22 = vpop.f32.mrf.mxu0 }
 0x12b   :  { %v471_v23 = vadd.f32 %v470_v22, %v202_v20 }
 0x12c   :  { %v472_v26 = vpop.f32.mrf.mxu0  ;;  %v482_v27 = vpop.f32.mrf.mxu1 }
 0x12d   :  { %v2081_v29 = vmax.f32 %v471_v23, 0.0  ;;  %v483_v31 = vadd.f32 %v482_v27, %v202_v20  ;;  %v473_v38 = vadd.f32 %v472_v26, %v206_v30 }
 0x12e   :  { %v476_v32 = vpop.f32.mrf.mxu0  ;;  %v484_v33 = vpop.f32.mrf.mxu1 }
 0x12f   :  { %v2084_v34 = vmax.f32 %v483_v31, 0.0  ;;  %v477_v35 = vadd.f32 %v476_v32, %v202_v20  ;;  %1043 = vadd.xlane.f32.xlu0 %v2081_v29  ;;  %v2093_v28 = vmax.f32 %v473_v38, 0.0  ;;  %v485_v44 = vadd.f32 %v484_v33, %v206_v30 }
 0x130   :  { %v488_v36 = vpop.f32.mrf.mxu1  ;;  %v478_v41 = vpop.f32.mrf.mxu0  ;;  %v659_v11 = vmul.f32 %v2128_v2, %v2081_v29  ;;  %v829_v32 = vand.u32 127, %v183_v24 }
 0x131   :  { %v2087_v39 = vmax.f32 %v477_v35, 0.0  ;;  %v489_v40 = vadd.f32 %v488_v36, %v202_v20  ;;  %v479_v45 = vadd.f32 %v478_v41, %v206_v30  ;;  %v2097_v48 = vmax.f32 %v485_v44, 0.0 }
 0x132   :  { %v490_v47 = vpop.f32.mrf.mxu1  ;;  %v661_v13 = vmul.f32 %v2128_v2, %v2084_v34  ;;  %v834_v35 = vadd.s32 4294967288, %v829_v32  ;;  %v2155_v41 = vsub.s32 %v829_v32, %v2015_v25 }
 0x133   :  { %v2089_v43 = vmax.f32 %v489_v40, 0.0  ;;  %1045 = vadd.xlane.f32.xlu1 %v2087_v39  ;;  %1047 = vadd.xlane.f32.xlu0 %v2084_v34  ;;  %v2099_v49 = vmax.f32 %v479_v45, 0.0  ;;  %v491_v51 = vadd.f32 %v490_v47, %v206_v30  ;;  %v660_v12 = vmul.f32 %v2128_v2, %v2087_v39 }
 0x134   :  { %v2158_v44 = vsub.s32 %v834_v35, %v2015_v25 }
 0x135   :  { %2542 = vst [vmem:[#allocation7_spill] sm:$0xff] %v2089_v43  ;;  %v2108_v53 = vmax.f32 %v491_v51, 0.0  ;;  %v662_v17 = vmul.f32 %v2128_v2, %v2089_v43 }
 0x137   :  { %1049 = vadd.xlane.f32.xlu1 %v2089_v43  ;;  %1055 = vadd.xlane.f32.xlu0 %v2093_v28  ;;  %2543 = vst [vmem:[#allocation8_spill] sm:$0xff] %v2108_v53 }
 0x13b   :  { %1057 = vadd.xlane.f32.xlu1 %v2099_v49  ;;  %1059 = vadd.xlane.f32.xlu0 %v2097_v48 }
 0x13f   :  { %1061 = vadd.xlane.f32.xlu1 %v2108_v53  ;;  %528 = vadd.xlane.f32.xlu0 %v524_v54 }
 0x143   :  { %530 = vadd.xlane.f32.xlu1 %v525_v59  ;;  %532 = vadd.xlane.f32.xlu0 %v526_v60 }
 0x147   :  { %534 = vadd.xlane.f32.xlu1 %v527_v61  ;;  %540 = vadd.xlane.f32.xlu0 %v536_v63 }
 0x14b   :  { %542 = vadd.xlane.f32.xlu1 %v537_v0  ;;  %544 = vadd.xlane.f32.xlu0 %v538_v1 }
 0x14f   :  { %546 = vadd.xlane.f32.xlu1 %v539_v3  ;;  %651 = vadd.xlane.f32.xlu0 %v647_v4 }
 0x153   :  { %653 = vadd.xlane.f32.xlu1 %v648_v7  ;;  %655 = vadd.xlane.f32.xlu0 %v649_v9 }
 0x157   :  { %657 = vadd.xlane.f32.xlu1 %v650_v10  ;;  %663 = vadd.xlane.f32.xlu0 %v659_v11 }
 0x15b   :  { %665 = vadd.xlane.f32.xlu1 %v660_v12  ;;  %667 = vadd.xlane.f32.xlu0 %v661_v13 }
 0x15f   :  { %669 = vadd.xlane.f32.xlu1 %v662_v17 }
 0x181   :  { %v784_v19 = vpop.xlane.xlu0 %783 }
 0x182   :  { %v2148_v22 = vmul.f32 0.0078125, %v784_v19 }
 0x184   :  { %v857_v25 = vmul.f32 %v2148_v22, %v2148_v22 }
 0x185   :  { %v811_v20 = vpop.xlane.xlu1 %810  ;;  %v809_v21 = vpop.xlane.xlu0 %808 }
 0x186   :  { %v816_v23 = vmul.f32 0.0078125, %v809_v21  ;;  %v817_v38 = vmul.f32 0.0078125, %v811_v20  ;;  %v868_v19 = vrot.slane %v857_v25, %v2155_v41 }
 0x188   :  { %v939_v26 = vmul.f32 %v816_v23, %v2148_v22  ;;  %v971_v63 = vmul.f32 %v817_v38, %v817_v38  ;;  %v970_v3 = vmul.f32 %v816_v23, %v816_v23 }
 0x189   :  { %v797_v27 = vpop.xlane.xlu0 %796 }
 0x18a   :  { %v950_v54 = vrot.slane %v939_v26, %v2155_v41  ;;  %v2172_v4 = vmul.f32 0.0078125, %v797_v27  ;;  %v985_v20 = vrot.slane %v971_v63, %v2158_v44  ;;  %v981_v26 = vrot.slane %v970_v3, %v2155_v41 }
 0x18b   :  { %v799_v30 = vpop.xlane.xlu1 %798 }
 0x18c   :  { %v2176_v10 = vmul.f32 0.0078125, %v799_v30  ;;  %v895_v27 = vmul.f32 %v2172_v4, %v2172_v4 }
 0x18d   :  { %v1032_v31 = vpop.xlane.xlu0 %1031 }
 0x18f   :  { %v1034_v33 = vpop.xlane.xlu1 %1033 }
 0x191   :  { %v786_v36 = vpop.xlane.xlu0 %785 }
 0x192   :  { %v2152_v40 = vmul.f32 0.0078125, %v786_v36  ;;  %v896_v36 = vmul.f32 %v2176_v10, %v2176_v10 }
 0x194   :  { %v788_v45 = vpop.xlane.xlu1 %787  ;;  %v940_v47 = vmul.f32 %v817_v38, %v2152_v40  ;;  %v858_v60 = vmul.f32 %v2152_v40, %v2152_v40  ;;  %v2193_v38 = vmul.f32 0.0078125, %v1034_v33 }
 0x195   :  { %v2161_v51 = vmul.f32 0.0078125, %v788_v45  ;;  %v2195_v45 = vmul.f32 0.0078125, %v1032_v31 }
 0x196   :  { %v954_v24 = vrot.slane %v940_v47, %v2158_v44  ;;  %v872_v12 = vrot.slane %v858_v60, %v2158_v44 }
 0x197   :  { %v859_v59 = vmul.f32 %v2161_v51, %v2161_v51 }
 0x198   :  { %v955_v61 = vsel %vm839_vm1, %v954_v24, %v950_v54 }
 0x199   :  { %v790_v0 = vpop.xlane.xlu1 %789  ;;  %v813_v1 = vpop.xlane.xlu0 %812  ;;  %v877_v11 = vrot.slane %v859_v59, %v2155_v41  ;;  %v873_v59 = vsel %vm839_vm1, %v872_v12, %v868_v19 }
 0x19a   :  { %v2174_v7 = vmul.f32 0.0078125, %v790_v0  ;;  %v818_v9 = vmul.f32 0.0078125, %v813_v1 }
 0x19c   :  { %v860_v13 = vmul.f32 %v2174_v7, %v2174_v7  ;;  %v941_v17 = vmul.f32 %v818_v9, %v2161_v51  ;;  %v972_v21 = vmul.f32 %v818_v9, %v818_v9 }
 0x19d   :  { %v801_v23 = vpop.xlane.xlu0 %800 }
 0x19e   :  { %v881_v30 = vrot.slane %v860_v13, %v2158_v44  ;;  %v815_v32 = vpop.xlane.xlu1 %814  ;;  %v2189_v35 = vmul.f32 0.0078125, %v801_v23  ;;  %v959_v54 = vrot.slane %v941_v17, %v2155_v41  ;;  %v990_v0 = vrot.slane %v972_v21, %v2155_v41 }
 0x19f   :  { %v819_v47 = vmul.f32 0.0078125, %v815_v32  ;;  %v986_v13 = vsel %vm839_vm1, %v985_v20, %v981_v26  ;;  %v906_v17 = vrot.slane %v895_v27, %v2155_v41  ;;  %v910_v21 = vrot.slane %v896_v36, %v2158_v44 }
 0x1a0   :  { %v897_v24 = vmul.f32 %v2189_v35, %v2189_v35  ;;  %v882_v60 = vsel %vm839_vm1, %v881_v30, %v877_v11  ;;  %v1099_v23 = vmul.f32 %v2193_v38, %v2193_v38  ;;  %v1098_v30 = vmul.f32 %v2195_v45, %v2195_v45 }
 0x1a1   :  { %v942_v25 = vmul.f32 %v819_v47, %v2174_v7  ;;  %v973_v63 = vmul.f32 %v819_v47, %v819_v47  ;;  %v883_v33 = vsel %vm850_vm2, %v882_v60, %v873_v59  ;;  %v1036_v1 = vpop.xlane.xlu0 %1035 }
 0x1a2   :  { %v803_v31 = vpop.xlane.xlu1 %802  ;;  %v885_v3 = vsel %vm853_vm3, %v883_v33, 0.0  ;;  %v2206_v9 = vmul.f32 0.0078125, %v1036_v1  ;;  %v915_v32 = vrot.slane %v897_v24, %v2155_v41  ;;  %v1109_v33 = vrot.slane %v1098_v30, %v2155_v41 }
 0x1a3   :  { %v963_v12 = vrot.slane %v942_v25, %v2158_v44  ;;  %v994_v11 = vrot.slane %v973_v63, %v2158_v44  ;;  %v2212_v19 = vmul.f32 0.0078125, %v803_v31  ;;  %886 = vadd.xlane.f32.xlu0 %v885_v3  ;;  %v911_v1 = vsel %vm839_vm1, %v910_v21, %v906_v17 }
 0x1a4   :  { %v1100_v26 = vmul.f32 %v2206_v9, %v2206_v9 }
 0x1a5   :  { %v898_v20 = vmul.f32 %v2212_v19, %v2212_v19  ;;  %v995_v27 = vsel %vm839_vm1, %v994_v11, %v990_v0  ;;  %v964_v47 = vsel %vm839_vm1, %v963_v12, %v959_v54  ;;  %v1113_v54 = vrot.slane %v1099_v23, %v2158_v44 }
 0x1a6   :  { %v1038_v59 = vpop.xlane.xlu1 %1037  ;;  %v996_v36 = vsel %vm850_vm2, %v995_v27, %v986_v13  ;;  %v965_v60 = vsel %vm850_vm2, %v964_v47, %v955_v61  ;;  %v1118_v61 = vrot.slane %v1100_v26, %v2155_v41 }
 0x1a7   :  { %v919_v25 = vrot.slane %v898_v20, %v2158_v44  ;;  %v2229_v63 = vmul.f32 0.0078125, %v1038_v59  ;;  %v998_v24 = vsel %vm853_vm3, %v996_v36, 0.0  ;;  %v2235_v0 = vsel %vm853_vm3, %v965_v60, 0.0 }
 0x1a8   :  { %999 = vadd.xlane.f32.xlu0 %v998_v24  ;;  %v1114_v17 = vsel %vm839_vm1, %v1113_v54, %v1109_v33 }
 0x1a9   :  { %v1101_v31 = vmul.f32 %v2229_v63, %v2229_v63  ;;  %v920_v3 = vsel %vm839_vm1, %v919_v25, %v915_v32 }
 0x1aa   :  { %v921_v13 = vsel %vm850_vm2, %v920_v3, %v911_v1 }
 0x1ab   :  { %v1122_v12 = vrot.slane %v1101_v31, %v2158_v44  ;;  %v923_v11 = vsel %vm853_vm3, %v921_v13, 0.0 }
 0x1ac   :  { %924 = vadd.xlane.f32.xlu1 %v923_v11 }
 0x1ad   :  { %v1123_v21 = vsel %vm839_vm1, %v1122_v12, %v1118_v61 }
 0x1ae   :  { %v1124_v23 = vsel %vm850_vm2, %v1123_v21, %v1114_v17 }
 0x1af   :  { %v1126_v30 = vsel %vm853_vm3, %v1124_v23, 0.0 }
 0x1b0   :  { %1127 = vadd.xlane.f32.xlu1 %v1126_v30 }
 0x1b8   :  { %v1044_v20 = vpop.xlane.xlu0 %1043 }
 0x1b9   :  { %v1051_v26 = vmul.f32 0.0078125, %v1044_v20 }
 0x1bb   :  { %v1136_v60 = vmul.f32 %v1051_v26, %v1051_v26  ;;  %v1067_v61 = vmul.f32 %v1051_v26, %v2195_v45 }
 0x1bc   :  { %v1046_v27 = vpop.xlane.xlu1 %1045  ;;  %v1048_v32 = vpop.xlane.xlu0 %1047 }
 0x1bd   :  { %v1052_v47 = vmul.f32 0.0078125, %v1046_v27  ;;  %v1053_v59 = vmul.f32 0.0078125, %v1048_v32  ;;  %v1147_v13 = vrot.slane %v1136_v60, %v2155_v41 }
 0x1bf   :  { %v1137_v36 = vmul.f32 %v1052_v47, %v1052_v47  ;;  %v1068_v1 = vmul.f32 %v1052_v47, %v2193_v38  ;;  %v1069_v33 = vmul.f32 %v1053_v59, %v2206_v9  ;;  %v1138_v54 = vmul.f32 %v1053_v59, %v1053_v59 }
 0x1c0   :  { %v1050_v25 = vpop.xlane.xlu1 %1049  ;;  %v1056_v24 = vpop.xlane.xlu0 %1055 }
 0x1c1   :  { %v1054_v31 = vmul.f32 0.0078125, %v1050_v25  ;;  %v1151_v3 = vrot.slane %v1137_v36, %v2158_v44  ;;  %v1082_v23 = vrot.slane %v1068_v1, %v2158_v44  ;;  %v1063_v30 = vmul.f32 0.0078125, %v1056_v24 }
 0x1c2   :  { %v1087_v32 = vrot.slane %v1069_v33, %v2155_v41  ;;  %v1156_v47 = vrot.slane %v1138_v54, %v2155_v41  ;;  %v1078_v36 = vrot.slane %v1067_v61, %v2155_v41 }
 0x1c3   :  { %v1070_v12 = vmul.f32 %v1054_v31, %v2229_v63  ;;  %v1139_v11 = vmul.f32 %v1054_v31, %v1054_v31  ;;  %v1152_v60 = vsel %vm839_vm1, %v1151_v3, %v1147_v13  ;;  %v1180_v33 = vmul.f32 %v1063_v30, %v2195_v45 }
 0x1c4   :  { %v1058_v17 = vpop.xlane.xlu1 %1057  ;;  %v1060_v21 = vpop.xlane.xlu0 %1059 }
 0x1c5   :  { %v1064_v20 = vmul.f32 0.0078125, %v1058_v17  ;;  %v1065_v27 = vmul.f32 0.0078125, %v1060_v21  ;;  %v1091_v26 = vrot.slane %v1070_v12, %v2158_v44  ;;  %v1160_v59 = vrot.slane %v1139_v11, %v2158_v44 }
 0x1c6   :  { %v1211_v17 = vmul.f32 %v1063_v30, %v1063_v30  ;;  %v1083_v12 = vsel %vm839_vm1, %v1082_v23, %v1078_v36  ;;  %v548_v23 = vmul.f32 %v2104_v52, %v2031_v42 }
 0x1c7   :  { %v1181_v25 = vmul.f32 %v1064_v20, %v2193_v38  ;;  %v1212_v31 = vmul.f32 %v1064_v20, %v1064_v20  ;;  %v1161_v24 = vsel %vm839_vm1, %v1160_v59, %v1156_v47  ;;  %v1092_v1 = vsel %vm839_vm1, %v1091_v26, %v1087_v32 }
 0x1c8   :  { %v1062_v43 = vpop.xlane.xlu1 %1061  ;;  %v1182_v54 = vmul.f32 %v1065_v27, %v2206_v9  ;;  %v1213_v11 = vmul.f32 %v1065_v27, %v1065_v27  ;;  %v1162_v61 = vsel %vm850_vm2, %v1161_v24, %v1152_v60  ;;  %v1093_v3 = vsel %vm850_vm2, %v1092_v1, %v1083_v12 }
 0x1c9   :  { %v1066_v21 = vmul.f32 0.0078125, %v1062_v43  ;;  %v1164_v38 = vsel %vm853_vm3, %v1162_v61, 0.0  ;;  %v1095_v13 = vsel %vm853_vm3, %v1093_v3, 0.0  ;;  %v1195_v20 = vrot.slane %v1181_v25, %v2158_v44 }
 0x1ca   :  { %v1226_v32 = vrot.slane %v1212_v31, %v2158_v44  ;;  %1165 = vadd.xlane.f32.xlu0 %v1164_v38  ;;  %v1191_v9 = vrot.slane %v1180_v33, %v2155_v41  ;;  %v1222_v43 = vrot.slane %v1211_v17, %v2155_v41  ;;  %v1200_v27 = vrot.slane %v1182_v54, %v2155_v41 }
 0x1cb   :  { %v1183_v45 = vmul.f32 %v1066_v21, %v2229_v63  ;;  %v1214_v30 = vmul.f32 %v1066_v21, %v1066_v21  ;;  %v1231_v47 = vrot.slane %v1213_v11, %v2155_v41  ;;  %v823_v31 = vmul.f32 %v2212_v19, %v2174_v7 }
 0x1cc   :  { %v1227_v63 = vsel %vm839_vm1, %v1226_v32, %v1222_v43  ;;  %v1196_v60 = vsel %vm839_vm1, %v1195_v20, %v1191_v9  ;;  %v822_v24 = vmul.f32 %v2189_v35, %v2161_v51  ;;  %v550_v54 = vmul.f32 %v2104_v52, %v2059_v6  ;;  %v529_v20 = vpop.xlane.xlu0 %528 }
 0x1cd   :  { %v1204_v26 = vrot.slane %v1183_v45, %v2158_v44  ;;  %v1235_v59 = vrot.slane %v1214_v30, %v2158_v44  ;;  %v821_v11 = vmul.f32 %v2176_v10, %v2152_v40  ;;  %v820_v7 = vmul.f32 %v2172_v4, %v2148_v22  ;;  %v2324_v45 = vpop.xlane.xlu1 %530 }
 0x1ce   :  { %552 = vadd.xlane.f32.xlu0 %v548_v23  ;;  %v848_v51 = vrot.slane %v823_v31, %v2158_v44  ;;  %v844_v35 = vrot.slane %v822_v24, %v2155_v41  ;;  %v549_v19 = vmul.f32 %v2104_v52, %v2035_v46  ;;  %v671_v21 = vmul.f32 %v2128_v2, %v2093_v28 }
 0x1cf   :  { %v1236_v36 = vsel %vm839_vm1, %v1235_v59, %v1231_v47  ;;  %v1205_v25 = vsel %vm839_vm1, %v1204_v26, %v1200_v27  ;;  %v838_v61 = vrot.slane %v821_v11, %v2158_v44  ;;  %v833_v40 = vrot.slane %v820_v7, %v2155_v41 }
 0x1d0   :  { %v1237_v1 = vsel %vm850_vm2, %v1236_v36, %v1227_v63  ;;  %v1206_v33 = vsel %vm850_vm2, %v1205_v25, %v1196_v60  ;;  %v551_v10 = vmul.f32 %v2104_v52, %v2065_v14  ;;  %v849_v22 = vsel %vm839_vm1, %v848_v51, %v844_v35  ;;  %v2322_v32 = vpop.xlane.xlu0 %532 }
 0x1d1   :  { %v1239_v17 = vsel %vm853_vm3, %v1237_v1, 0.0  ;;  %v1208_v12 = vsel %vm853_vm3, %v1206_v33, 0.0  ;;  %v673_v4 = vmul.f32 %v2128_v2, %v2097_v48  ;;  %v840_v3 = vsel %vm839_vm1, %v838_v61, %v833_v40  ;;  %v2326_v9 = vpop.xlane.xlu1 %534 }
 0x1d2   :  { %1240 = vadd.xlane.f32.xlu1 %v1239_v17  ;;  %556 = vadd.xlane.f32.xlu0 %v550_v54  ;;  %v851_v38 = vsel %vm850_vm2, %v849_v22, %v840_v3  ;;  %v672_v44 = vmul.f32 %v2128_v2, %v2099_v49  ;;  %v674_v52 = vmul.f32 %v2128_v2, %v2108_v53  ;;  %vm1271_vm1 = vcmask 0  }
 0x1d3   :  { %v854_v41 = vsel %vm853_vm3, %v851_v38, 0.0 }
 0x1d4   :  { %v541_v30 = vpop.xlane.xlu0 %540 }
 0x1d5   :  { %v2330_v23 = vpop.xlane.xlu1 %542  ;;  %v560_v54 = vmax.f32 %v529_v20, %v541_v30 }
 0x1d6   :  { %554 = vadd.xlane.f32.xlu1 %v549_v19  ;;  %675 = vadd.xlane.f32.xlu0 %v671_v21  ;;  %v561_v7 = vmax.f32 %v2324_v45, %v2330_v23 }
 0x1d8   :  { %v2328_v43 = vpop.xlane.xlu0 %544 }
 0x1d9   :  { %v2334_v2 = vpop.xlane.xlu1 %546  ;;  %v562_v51 = vmax.f32 %v2322_v32, %v2328_v43 }
 0x1da   :  { %558 = vadd.xlane.f32.xlu1 %v551_v10  ;;  %679 = vadd.xlane.f32.xlu0 %v673_v4 }
 0x1dc   :  { %v2332_v27 = vpop.xlane.xlu0 %651 }
 0x1de   :  { %677 = vadd.xlane.f32.xlu1 %v672_v44  ;;  %855 = vadd.xlane.f32.xlu0 %v854_v41 }
 0x1e2   :  { %681 = vadd.xlane.f32.xlu1 %v674_v52  ;;  %1096 = vadd.xlane.f32.xlu0 %v1095_v13  ;;  %v2336_v13 = vpop.xlane.xlu0 %655 }
 0x1e6   :  { %968 = vadd.xlane.f32.xlu1 %v2235_v0  ;;  %v2338_v0 = vpop.xlane.xlu1 %653  ;;  %v2340_v47 = vpop.xlane.xlu0 %663 }
 0x1e7   :  { %v683_v61 = vmax.f32 %v2332_v27, %v2340_v47 }
 0x1ea   :  { %1209 = vadd.xlane.f32.xlu1 %v1208_v12  ;;  %v2342_v26 = vpop.xlane.xlu1 %657  ;;  %v2344_v59 = vpop.xlane.xlu0 %667 }
 0x1ee   :  { %v2346_v36 = vpop.xlane.xlu1 %665 }
 0x1f2   :  { %v2348_v25 = vpop.xlane.xlu1 %669 }
 0x22c   :  { %v887_v63 = vpop.xlane.xlu0 %886 }
 0x22d   :  { %vm890_vm5 = vcmp.eq.f32.partialorder %v887_v63, inf  ;;  %vm892_vm6 = vcmp.eq.f32.partialorder %v887_v63, 0.0 }
 0x231   :  { %v1000_v60 = vpop.xlane.xlu0 %999 }
 0x232   :  { %1354 = vrsqrt.f32 %v1000_v60  ;;  %vm1003_vm4 = vcmp.eq.f32.partialorder %v1000_v60, inf  ;;  %v1006_v4 = vand.u32 2147483648, %v1000_v60  ;;  %vm1005_vm7 = vcmp.eq.f32.partialorder %v1000_v60, 0.0 }
 0x233   :  { %1356 = vrsqrt.f32 %v887_v63 }
 0x235   :  { %v925_v31 = vpop.xlane.xlu1 %924 }
 0x236   :  { %1358 = vrsqrt.f32 %v925_v31  ;;  %vm928_vm8 = vcmp.eq.f32.partialorder %v925_v31, inf  ;;  %vm930_vm9 = vcmp.eq.f32.partialorder %v925_v31, 0.0 }
 0x239   :  { %v2352_v11 = vpop.xlane.xlu1 %1127 }
 0x23a   :  { %vm1131_vm10 = vcmp.eq.f32.partialorder %v2352_v11, inf  ;;  %vm1133_vm11 = vcmp.eq.f32.partialorder %v2352_v11, 0.0 }
 0x23f   :  { %v1355_v24 = vpop.eup %1354 }
 0x240   :  { %v1357_v1 = vpop.eup %1356  ;;  %v1002_v17 = vmul.f32 %v1355_v24, %v1000_v60  ;;  %v893_v24 = vand.u32 2147483648, %v887_v63 }
 0x241   :  { %v889_v12 = vmul.f32 %v1357_v1, %v887_v63 }
 0x242   :  { %v1004_v22 = vsel %vm1003_vm4, %v1000_v60, %v1002_v17  ;;  %v931_v17 = vand.u32 2147483648, %v925_v31 }
 0x243   :  { %v1359_v21 = vpop.eup %1358  ;;  %v891_v3 = vsel %vm890_vm5, %v887_v63, %v889_v12  ;;  %v1007_v53 = vsel %vm1005_vm7, %v1006_v4, %v1004_v22 }
 0x244   :  { %v927_v1 = vmul.f32 %v1359_v21, %v925_v31 }
 0x246   :  { %v929_v21 = vsel %vm928_vm8, %v925_v31, %v927_v1  ;;  %v2544_v31 = vmax.f32 %v2326_v9, %v2334_v2 }
 0x253   :  { %v2350_v33 = vpop.xlane.xlu0 %1165 }
 0x254   :  { %1360 = vrsqrt.f32 %v2350_v33  ;;  %vm1169_vm12 = vcmp.eq.f32.partialorder %v2350_v33, inf  ;;  %vm1171_vm13 = vcmp.eq.f32.partialorder %v2350_v33, 0.0 }
 0x257   :  { %v553_v19 = vpop.xlane.xlu0 %552 }
 0x258   :  { %v564_v10 = vmax.f32 %v560_v54, %v553_v19  ;;  %v894_v54 = vsel %vm892_vm6, %v893_v24, %v891_v3 }
 0x25a   :  { %v568_v38 = vsub.f32 %v529_v20, %v564_v10  ;;  %v580_v44 = vsub.f32 %v541_v30, %v564_v10  ;;  %v592_v41 = vsub.f32 %v553_v19, %v564_v10  ;;  %v1008_v19 = vmax.f32 %v1007_v53, 1e-06 }
 0x25b   :  { %v2364_v52 = vpop.xlane.xlu1 %1240  ;;  %v557_v35 = vpop.xlane.xlu0 %556  ;;  %v685_v53 = vmax.f32 %v2336_v13, %v2344_v59 }
 0x25c   :  { %v572_v14 = vmul.f32 1.442695, %v568_v38  ;;  %v584_v40 = vmul.f32 1.442695, %v580_v44  ;;  %v566_v18 = vmax.f32 %v562_v51, %v557_v35  ;;  %v596_v20 = vmul.f32 1.442695, %v592_v41 }
 0x25d   :  { %v933_v51 = vmax.f32 %v894_v54, 1e-06  ;;  %vm1244_vm14 = vcmp.eq.f32.partialorder %v2364_v52, inf  ;;  %vm1246_vm15 = vcmp.eq.f32.partialorder %v2364_v52, 0.0 }
 0x25e   :  { %1362 = vpow2.f32 %v572_v14  ;;  %v570_v30 = vsub.f32 %v2322_v32, %v566_v18  ;;  %v582_v12 = vsub.f32 %v2328_v43, %v566_v18  ;;  %v932_v43 = vsel %vm930_vm9, %v931_v17, %v929_v21 }
 0x25f   :  { %v555_v60 = vpop.xlane.xlu1 %554  ;;  %1364 = vpow2.f32 %v584_v40  ;;  %v676_v22 = vpop.xlane.xlu0 %675  ;;  %v1009_v41 = vmul.f32 %v1008_v19, %v933_v51 }
 0x260   :  { %v565_v10 = vmax.f32 %v561_v7, %v555_v60  ;;  %1366 = vrsqrt.f32 %v2352_v11  ;;  %v576_v63 = vmul.f32 1.442695, %v570_v30  ;;  %v588_v4 = vmul.f32 1.442695, %v582_v12 }
 0x261   :  { %1368 = vrsqrt.f32 %v2364_v52  ;;  %v687_v3 = vmax.f32 %v683_v61, %v676_v22  ;;  %v594_v7 = vsub.f32 %v557_v35, %v566_v18  ;;  %v934_v61 = vmax.f32 %v932_v43, 1e-06 }
 0x262   :  { %v569_v14 = vsub.f32 %v2324_v45, %v565_v10  ;;  %v581_v32 = vsub.f32 %v2330_v23, %v565_v10  ;;  %1370 = vpow2.f32 %v596_v20  ;;  %v593_v24 = vsub.f32 %v555_v60, %v565_v10 }
 0x263   :  { %v2378_v40 = vpop.xlane.xlu1 %558  ;;  %1372 = vpow2.f32 %v576_v63  ;;  %v691_v45 = vsub.f32 %v2332_v27, %v687_v3  ;;  %v703_v23 = vsub.f32 %v2340_v47, %v687_v3  ;;  %v715_v1 = vsub.f32 %v676_v22, %v687_v3  ;;  %v680_v35 = vpop.xlane.xlu0 %679 }
 0x264   :  { %v574_v38 = vmul.f32 1.442695, %v569_v14  ;;  %v586_v44 = vmul.f32 1.442695, %v581_v32  ;;  %1374 = vpow2.f32 %v588_v4  ;;  %v2386_v18 = vmax.f32 %v2544_v31, %v2378_v40  ;;  %v1361_v22 = vpop.eup %1360 }
 0x265   :  { %v600_v54 = vmul.f32 1.442695, %v594_v7  ;;  %v695_v17 = vmul.f32 1.442695, %v691_v45  ;;  %v707_v20 = vmul.f32 1.442695, %v703_v23  ;;  %v689_v47 = vmax.f32 %v685_v53, %v680_v35 }
 0x266   :  { %1376 = vpow2.f32 %v574_v38  ;;  %v719_v12 = vmul.f32 1.442695, %v715_v1  ;;  %v598_v27 = vmul.f32 1.442695, %v593_v24  ;;  %v2545_v60 = vmax.f32 %v2338_v0, %v2346_v36 }
 0x267   :  { %1378 = vpow2.f32 %v586_v44  ;;  %v678_v30 = vpop.xlane.xlu1 %677  ;;  %v571_v21 = vsub.f32 %v2326_v9, %v2386_v18  ;;  %v935_v10 = vmul.f32 %v934_v61, %v933_v51  ;;  %v693_v63 = vsub.f32 %v2336_v13, %v689_v47 }
 0x268   :  { %1380 = vrcp.f32 %v1009_v41  ;;  %v688_v19 = vmax.f32 %v2545_v60, %v678_v30  ;;  %v705_v4 = vsub.f32 %v2344_v59, %v689_v47  ;;  %v717_v32 = vsub.f32 %v680_v35, %v689_v47 }
 0x269   :  { %1382 = vpow2.f32 %v695_v17  ;;  %v699_v43 = vmul.f32 1.442695, %v693_v63  ;;  %v578_v38 = vmul.f32 1.442695, %v571_v21  ;;  %v583_v9 = vsub.f32 %v2334_v2, %v2386_v18 }
 0x26a   :  { %1384 = vpow2.f32 %v707_v20  ;;  %v692_v3 = vsub.f32 %v2338_v0, %v688_v19  ;;  %v686_v13 = vmax.f32 %v2342_v26, %v2348_v25  ;;  %v711_v59 = vmul.f32 1.442695, %v705_v4 }
 0x26b   :  { %1386 = vpow2.f32 %v600_v54  ;;  %v2395_v14 = vpop.eup %1362  ;;  %v723_v44 = vmul.f32 1.442695, %v717_v32  ;;  %v1168_v0 = vmul.f32 %v1361_v22, %v2350_v33  ;;  %v704_v23 = vsub.f32 %v2346_v36, %v688_v19 }
 0x26c   :  { %1388 = vpow2.f32 %v719_v12  ;;  %v2398_v53 = vpop.eup %1364  ;;  %v697_v45 = vmul.f32 1.442695, %v692_v3  ;;  %v716_v2 = vsub.f32 %v678_v30, %v688_v19  ;;  %v590_v35 = vmul.f32 1.442695, %v583_v9  ;;  %v682_v12 = vpop.xlane.xlu1 %681 }
 0x26d   :  { %1390 = vpow2.f32 %v598_v27  ;;  %v1367_v7 = vpop.eup %1366  ;;  %v604_v24 = vadd.f32 %v2398_v53, %v2395_v14  ;;  %v595_v36 = vsub.f32 %v2378_v40, %v2386_v18  ;;  %v709_v17 = vmul.f32 1.442695, %v704_v23 }
 0x26e   :  { %1392 = vrcp.f32 %v935_v10  ;;  %v1369_v51 = vpop.eup %1368  ;;  %v1130_v31 = vmul.f32 %v1367_v7, %v2352_v11  ;;  %v721_v20 = vmul.f32 1.442695, %v716_v2  ;;  %v1134_v30 = vand.u32 2147483648, %v2352_v11 }
 0x26f   :  { %1394 = vpow2.f32 %v699_v43  ;;  %v2404_v41 = vpop.eup %1370  ;;  %v1170_v47 = vsel %vm1169_vm12, %v2350_v33, %v1168_v0  ;;  %v1172_v21 = vand.u32 2147483648, %v2350_v33  ;;  %v1243_v10 = vmul.f32 %v1369_v51, %v2364_v52 }
 0x270   :  { %v2410_v61 = vpop.eup %1372  ;;  %1396 = vpow2.f32 %v711_v59  ;;  %v608_v60 = vadd.f32 %v2404_v41, %v604_v24  ;;  %v1132_v22 = vsel %vm1131_vm10, %v2352_v11, %v1130_v31  ;;  %v690_v63 = vmax.f32 %v686_v13, %v682_v12 }
 0x271   :  { %v2414_v1 = vpop.eup %1374  ;;  %1398 = vpow2.f32 %v578_v38  ;;  %v1173_v32 = vsel %vm1171_vm13, %v1172_v21, %v1170_v47  ;;  %v602_v43 = vmul.f32 1.442695, %v595_v36  ;;  %v1135_v33 = vsel %vm1133_vm11, %v1134_v30, %v1132_v22  ;;  %v969_v47 = vpop.xlane.xlu1 %968 }
 0x272   :  { %1400 = vpow2.f32 %v723_v44  ;;  %v606_v40 = vadd.f32 %v2414_v1, %v2410_v61  ;;  %v694_v9 = vsub.f32 %v2342_v26, %v690_v63  ;;  %v1245_v13 = vsel %vm1244_vm14, %v2364_v52, %v1243_v10 }
 0x273   :  { %v2418_v54 = vpop.eup %1376  ;;  %1402 = vpow2.f32 %v697_v45  ;;  %v1175_v0 = vmax.f32 %v1173_v32, 1e-06  ;;  %v1247_v24 = vand.u32 2147483648, %v2364_v52  ;;  %v706_v11 = vsub.f32 %v2348_v25, %v690_v63  ;;  %v856_v32 = vpop.xlane.xlu0 %855 }
 0x274   :  { %v2422_v27 = vpop.eup %1378  ;;  %1404 = vpow2.f32 %v709_v17  ;;  %v701_v23 = vmul.f32 1.442695, %v694_v9  ;;  %v718_v17 = vsub.f32 %v682_v12, %v690_v63  ;;  %v620_v30 = vmul.f32 %v2398_v53, %v2039_v50 }
 0x275   :  { %v1381_v19 = vpop.eup %1380  ;;  %1406 = vpow2.f32 %v590_v35  ;;  %v605_v3 = vadd.f32 %v2422_v27, %v2418_v54  ;;  %v1174_v35 = vmax.f32 %v1135_v33, 1e-06  ;;  %v1248_v36 = vsel %vm1246_vm15, %v1247_v24, %v1245_v13 }
 0x276   :  { %v1383_v18 = vpop.eup %1382  ;;  %1408 = vpow2.f32 %v721_v20  ;;  %v616_v20 = vmul.f32 %v2395_v14, %v2027_v37  ;;  %v713_v52 = vmul.f32 1.442695, %v706_v11  ;;  %v725_v21 = vmul.f32 1.442695, %v718_v17 }
 0x277   :  { %v1385_v4 = vpop.eup %1384  ;;  %1410 = vrcp.f32 %v608_v60  ;;  %v1176_v10 = vmul.f32 %v1175_v0, %v1174_v35  ;;  %v1249_v25 = vmax.f32 %v1248_v36, 1e-06  ;;  %v739_v63 = vmul.f32 %v1383_v18, %v2044_v56 }
 0x278   :  { %v2437_v7 = vpop.eup %1386  ;;  %v727_v38 = vadd.f32 %v1385_v4, %v1383_v18  ;;  %1412 = vpow2.f32 %v602_v43  ;;  %v743_v37 = vmul.f32 %v1385_v4, %v2081_v29  ;;  %v1011_v50 = vmul.f32 %v1381_v19, %v969_v47 }
 0x279   :  { %v1389_v51 = vpop.eup %1388  ;;  %v610_v59 = vadd.f32 %v2437_v7, %v606_v40  ;;  %v624_v53 = vadd.f32 %v620_v30, %v616_v20  ;;  %v628_v33 = vmul.f32 %v2404_v41, %v2031_v42  ;;  %v618_v13 = vmul.f32 %v2410_v61, %v2054_v62 }
 0x27a   :  { %v2445_v44 = vpop.eup %1390  ;;  %v731_v45 = vadd.f32 %v1389_v51, %v727_v38  ;;  %v622_v19 = vmul.f32 %v2414_v1, %v2061_v8  ;;  %v747_v18 = vadd.f32 %v743_v37, %v739_v63  ;;  %v1012_v4 = vsub.f32 1.0, %v1011_v50 }
 0x27b   :  { %v1393_v2 = vpop.eup %1392  ;;  %v609_v26 = vadd.f32 %v2445_v44, %v605_v3  ;;  %v632_v24 = vadd.f32 %v628_v33, %v624_v53  ;;  %v630_v36 = vmul.f32 %v2437_v7, %v2059_v6 }
 0x27c   :  { %v1395_v31 = vpop.eup %1394  ;;  %1414 = vrcp.f32 %v731_v45  ;;  %v937_v38 = vmul.f32 %v1393_v2, %v856_v32  ;;  %v626_v2 = vadd.f32 %v622_v19, %v618_v13  ;;  %v1021_v11 = vsel %vm1013_vm0, %v1012_v4, 0.0 }
 0x27d   :  { %1416 = vrcp.f32 %v610_v59  ;;  %v1397_v60 = vpop.eup %1396  ;;  %v1250_v59 = vmul.f32 %v1249_v25, %v1174_v35  ;;  %v741_v62 = vmul.f32 %v1395_v31, %v2067_v15  ;;  %v621_v15 = vmul.f32 %v2422_v27, %v2041_v55 }
 0x27e   :  { %1418 = vpow2.f32 %v701_v23  ;;  %v2455_v40 = vpop.eup %1398  ;;  %v729_v22 = vadd.f32 %v1397_v60, %v1395_v31  ;;  %v751_v23 = vmul.f32 %v1389_v51, %v2093_v28  ;;  %v938_v41 = vsub.f32 1.0, %v937_v38  ;;  %v763_v28 = vld [vmem:[%s2532_s5] sm:$0xff] }
 0x27f   :  { %1420 = vrcp.f32 %v609_v26  ;;  %v1401_v12 = vpop.eup %1400  ;;  %v745_v61 = vmul.f32 %v1397_v60, %v2084_v34  ;;  %v617_v51 = vmul.f32 %v2418_v54, %v2049_v58  ;;  %v769_v34 = vld [vmem:[%s2533_s6] sm:$0xff]  ;;  %v1022_v55 = vrot.slane %v1021_v11, 4 }
 0x280   :  { %1422 = vpow2.f32 %v713_v52  ;;  %v1403_v14 = vpop.eup %1402  ;;  %v733_v3 = vadd.f32 %v1401_v12, %v729_v22  ;;  %v755_v26 = vadd.f32 %v751_v23, %v747_v18  ;;  %v1014_v30 = vsel %vm1013_vm0, %v938_v41, 0.0 }
 0x281   :  { %1424 = vpow2.f32 %v725_v21  ;;  %v1405_v43 = vpop.eup %1404  ;;  %v749_v60 = vadd.f32 %v745_v61, %v741_v62  ;;  %v740_v58 = vmul.f32 %v1403_v14, %v2046_v57  ;;  %v634_v21 = vadd.f32 %v630_v36, %v626_v2 }
 0x282   :  { %1426 = vrcp.f32 %v1176_v10  ;;  %v2459_v9 = vpop.eup %1406  ;;  %v728_v56 = vadd.f32 %v1405_v43, %v1403_v14  ;;  %v744_v54 = vmul.f32 %v1405_v43, %v2087_v39  ;;  %v625_v22 = vadd.f32 %v621_v15, %v617_v51  ;;  %v2547_v51 = vld [vmem:[#allocation7_spill] sm:$0xff] }
 0x283   :  { %1428 = vrcp.f32 %v733_v3  ;;  %v1409_v29 = vpop.eup %1408  ;;  %v607_v42 = vadd.f32 %v2459_v9, %v2455_v40  ;;  %v753_v6 = vmul.f32 %v1401_v12, %v2097_v48  ;;  %v1015_v7 = vrot.slane %v1014_v30, 4  ;;  %v1097_v3 = vpop.xlane.xlu0 %1096 }
 0x284   :  { %v1411_v0 = vpop.eup %1410  ;;  %v732_v45 = vadd.f32 %v1409_v29, %v728_v56  ;;  %1430 = vrcp.f32 %v1250_v59  ;;  %v629_v57 = vmul.f32 %v2445_v44, %v2035_v46  ;;  %v748_v14 = vadd.f32 %v744_v54, %v740_v58  ;;  %v2548_v58 = vld [vmem:[#allocation5_spill] sm:$0xff] }
 0x285   :  { %v2472_v8 = vpop.eup %1412  ;;  %v636_v1 = vmul.f32 %v1411_v0, %v632_v24  ;;  %v757_v39 = vadd.f32 %v753_v6, %v749_v60  ;;  %v1023_v43 = vadd.f32 %v1022_v55, %v1021_v11  ;;  %v752_v56 = vmul.f32 %v1409_v29, %v2099_v49  ;;  %v770_v29 = vld [vmem:[%s2533_s6 + $0x8] sm:$0xff] }
 0x286   :  { %1432 = vrcp.f32 %v732_v45  ;;  %v611_v20 = vadd.f32 %v2472_v8, %v607_v42  ;;  %v633_v33 = vadd.f32 %v629_v57, %v625_v22  ;;  %v1016_v19 = vadd.f32 %v1015_v7, %v1014_v30  ;;  %v1210_v45 = vpop.xlane.xlu1 %1209  ;;  %v764_v42 = vld [vmem:[%s2532_s5 + $0x8] sm:$0xff] }
 0x287   :  { %v765_v52 = vmul.f32 %v763_v28, %v636_v1  ;;  %v756_v0 = vadd.f32 %v752_v56, %v748_v14  ;;  %v1024_v24 = vrot.slane %v1023_v43, 2  ;;  %v619_v41 = vmul.f32 %v2455_v40, %v2057_v5 }
 0x288   :  { %1434 = vrcp.f32 %v611_v20  ;;  %v623_v49 = vmul.f32 %v2459_v9, %v2070_v16 }
 0x289   :  { %v1415_v35 = vpop.eup %1414  ;;  %v1025_v9 = vadd.f32 %v1024_v24, %v1023_v43 }
 0x28a   :  { %v1417_v31 = vpop.eup %1416  ;;  %v759_v17 = vmul.f32 %v1415_v35, %v755_v26  ;;  %v1017_v26 = vrot.slane %v1016_v19, 2  ;;  %v2546_v35 = vld [vmem:[#allocation6_spill] sm:$0xff] }
 0x28b   :  { %v1419_v47 = vpop.eup %1418  ;;  %v638_v63 = vmul.f32 %v1417_v31, %v634_v21  ;;  %v627_v31 = vadd.f32 %v623_v49, %v619_v41 }
 0x28c   :  { %v1421_v27 = vpop.eup %1420  ;;  %v771_v10 = vmul.f32 %v769_v34, %v759_v17  ;;  %v1018_v20 = vadd.f32 %v1017_v26, %v1016_v19 }
 0x28d   :  { %v1423_v25 = vpop.eup %1422  ;;  %v767_v18 = vmul.f32 %v763_v28, %v638_v63  ;;  %v637_v44 = vmul.f32 %v1421_v27, %v633_v33  ;;  %v742_v28 = vmul.f32 %v1419_v47, %v2546_v35 }
 0x28e   :  { %v1425_v32 = vpop.eup %1424  ;;  %v775_v37 = vadd.f32 %v771_v10, %v765_v52  ;;  %v730_v50 = vadd.f32 %v1423_v25, %v1419_v47  ;;  %v746_v15 = vmul.f32 %v1423_v25, %v2547_v51  ;;  %v631_v47 = vmul.f32 %v2472_v8, %v2548_v58  ;;  %v2549_v25 = vld [vmem:[#allocation8_spill] sm:$0xff] }
 0x28f   :  { %v1427_v53 = vpop.eup %1426  ;;  %v766_v5 = vmul.f32 %v764_v42, %v637_v44  ;;  %v1026_v52 = vrot.slane %v1025_v9, 1  ;;  %v754_v22 = vmul.f32 %v1425_v32, %v2549_v25  ;;  %v1019_v6 = vrot.slane %v1018_v20, 1 }
 0x290   :  { %v1429_v38 = vpop.eup %1428  ;;  %779 = vst [vmem:[%s2534_s7] sm:$0xff] %v775_v37  ;;  %v734_v48 = vadd.f32 %v1425_v32, %v730_v50  ;;  %v1178_v12 = vmul.f32 %v1427_v53, %v1097_v3  ;;  %v750_v54 = vadd.f32 %v746_v15, %v742_v28  ;;  %v635_v10 = vadd.f32 %v631_v47, %v627_v31 }
 0x291   :  { %v761_v13 = vmul.f32 %v1429_v38, %v757_v39  ;;  %v1431_v46 = vpop.eup %1430  ;;  %v1027_v57 = vadd.f32 %v1026_v52, %v1025_v9  ;;  %v1020_v14 = vadd.f32 %v1019_v6, %v1018_v20 }
 0x292   :  { %1436 = vrcp.f32 %v734_v48  ;;  %v1179_v4 = vsub.f32 1.0, %v1178_v12  ;;  %v1252_v61 = vmul.f32 %v1431_v46, %v1210_v45  ;;  %v758_v37 = vadd.f32 %v754_v22, %v750_v54 }
 0x293   :  { %v773_v59 = vmul.f32 %v769_v34, %v761_v13  ;;  %v1433_v23 = vpop.eup %1432  ;;  %v1028_v33 = vadd.f32 %v1027_v57, %v1020_v14 }
 0x294   :  { %v1254_v62 = vsel %vm1013_vm0, %v1179_v4, 0.0  ;;  %v760_v2 = vmul.f32 %v1433_v23, %v756_v0  ;;  %v1253_v34 = vsub.f32 1.0, %v1252_v61 }
 0x295   :  { %v777_v1 = vadd.f32 %v773_v59, %v767_v18  ;;  %v1255_v11 = vrot.slane %v1254_v62, 4  ;;  %v1435_v55 = vpop.eup %1434  ;;  %v1030_v32 = vmul.f32 0.5, %v1028_v33 }
 0x296   :  { %v772_v16 = vmul.f32 %v770_v29, %v760_v2  ;;  %v1261_v36 = vsel %vm1013_vm0, %v1253_v34, 0.0  ;;  %v639_v63 = vmul.f32 %v1435_v55, %v635_v10 }
 0x297   :  { %781 = vst [vmem:[%s2534_s7 + $0x10] sm:$0xff] %v777_v1  ;;  %v1256_v40 = vadd.f32 %v1255_v11, %v1254_v62  ;;  %v1262_v60 = vrot.slane %v1261_v36, 4 }
 0x298   :  { %v776_v17 = vadd.f32 %v772_v16, %v766_v5  ;;  %v768_v43 = vmul.f32 %v764_v42, %v639_v63 }
 0x299   :  { %v1257_v30 = vrot.slane %v1256_v40, 2  ;;  %v1263_v21 = vadd.f32 %v1262_v60, %v1261_v36 }
 0x29a   :  { %780 = vst [vmem:[%s2534_s7 + $0x8] sm:$0xff] %v776_v17 }
 0x29b   :  { %v1258_v27 = vadd.f32 %v1257_v30, %v1256_v40  ;;  %v1264_v7 = vrot.slane %v1263_v21, 2 }
 0x29d   :  { %v1259_v53 = vrot.slane %v1258_v27, 1  ;;  %v1265_v8 = vadd.f32 %v1264_v7, %v1263_v21 }
 0x29f   :  { %v1437_v50 = vpop.eup %1436  ;;  %v1266_v3 = vrot.slane %v1265_v8, 1  ;;  %v1260_v48 = vadd.f32 %v1259_v53, %v1258_v27 }
 0x2a0   :  { %v762_v39 = vmul.f32 %v1437_v50, %v758_v37 }
 0x2a1   :  { %v1267_v12 = vadd.f32 %v1266_v3, %v1265_v8 }
 0x2a2   :  { %v774_v38 = vmul.f32 %v770_v29, %v762_v39 }
 0x2a3   :  { %v1268_v56 = vadd.f32 %v1267_v12, %v1260_v48 }
 0x2a4   :  { %v778_v13 = vadd.f32 %v774_v38, %v768_v43 }
 0x2a5   :  { %v1269_v19 = vmul.f32 0.5, %v1268_v56 }
 0x2a6   :  { %782 = vst [vmem:[%s2534_s7 + $0x18] sm:$0xff] %v778_v13 }
 0x2a7   :  { %v1270_v18 = vadd.f32 %v1269_v19, %v1030_v32 }
 0x2a9   :  { %1272 = vst.msk [vmem:[#allocation2] sm:$0x1] %vm1271_vm1, %v1270_v18 }
 0x2aa   :  { %1449 = shalt.err (!%p1446_p4)
}
 0x2ab   :  { %1284 = dma.vmem_to_hbm [thread:$0]  %s1282_s0, 16, %s2535_s8, [#allocation3]  }
 0x2ac   :  { %1458 = dma.done.wait [#allocation3], 16  }
 0x2ad   :  { %1459 = vsyncadd [#allocation3], 4294967280 }
 0x2ae   :  { %1290 = vsyncpa [#allocation3], 1 }

</bundles_post_ra>
